<compile_context>
chip_gen: v7x
topology: tpu7x:2x2x1
jax: 0.10.0
libtpu: 0.0.40
codegen_flags: <defaults>
</compile_context>

<pallas_src>
import functools

import jax
import jax.numpy as jnp
from jax import lax
from jax.experimental import pallas as pl
from jax.experimental.pallas import tpu as pltpu


def _round_up(a: int, b: int) -> int:
    return (a + b - 1) // b * b


def _vmem_block_bytes(shape, dtype) -> int:
    """Approximate VMEM footprint of one (>=2D) block, including tile padding."""
    itemsize = jnp.dtype(dtype).itemsize
    sublane = max(8, 32 // itemsize)           # 8 for f32, 16 for bf16
    dims = list(shape)
    dims[-1] = _round_up(dims[-1], 128)
    dims[-2] = _round_up(dims[-2], sublane)
    total = itemsize
    for d in dims:
        total *= d
    return total


def _pick_row_block(h_out: int, w_out: int, row_cap: int) -> int:
    """Divisor bh of h_out, preferring bh*w_out % 8 == 0, maximizing rows<=cap."""
    best = None
    for bh in range(1, h_out + 1):
        if h_out % bh:
            continue
        rows = bh * w_out
        if rows % 8 == 0 and rows <= row_cap:
            if best is None or rows > best * w_out:
                best = bh
    if best is not None:
        return best
    for bh in range(1, h_out + 1):              # smallest sublane-dense block
        if h_out % bh == 0 and (bh * w_out) % 8 == 0:
            return bh
    return h_out                                # fall back to the full dim


def conv_bn_act2d(x_nchw, weight, gamma, beta, running_mean, running_var,
                  *, stride=(1, 1), padding=(1, 1), eps=1e-5,
                  acc_budget_bytes=128 * 1024, lane=128):
    """ConvBnAct2d forward. x_nchw: [N, Cin, H, W], weight: [Cout, Cin, KH, KW]."""
    n, cin, h, w = x_nchw.shape
    cout, wcin, kh, kw = weight.shape
    assert wcin == cin, "groups != 1 not supported"
    sh, sw = stride
    ph, pw = padding

    h_out = (h + 2 * ph - kh) // sh + 1
    w_out = (w + 2 * pw - kw) // sw + 1
    hp = h + 2 * ph
    wp = w + 2 * pw

    # ---- single fused glue pass: NCHW -> NHWC, spatial zero-pad, bf16 cast ----
    x_pad = jnp.pad(jnp.transpose(x_nchw, (0, 2, 3, 1)),
                    ((0, 0), (ph, ph), (pw, pw), (0, 0))).astype(jnp.bfloat16)

    # ---- BN (inference mode) scale / shift, kept in f32 for the epilogue ------
    inv_std = 1.0 / jnp.sqrt(running_var + eps)
    scale = gamma * inv_std                                   # [Cout]
    shift = beta - running_mean * scale                       # [Cout]

    cout_pad = _round_up(cout, lane)
    ct = 256 if cout_pad % 256 == 0 else 128                  # Cout tile
    nc = cout_pad // ct

    # ---- weights: [Cout,Cin,KH,KW] -> (kt, K, Cout_pad) bf16 (unscaled) -------
    fuse_all = (kh * kw * cin) <= 512
    kt = 1 if fuse_all else kh
    k_depth = kh * kw * cin if fuse_all else kw * cin
    w_taps = jnp.transpose(weight, (2, 3, 1, 0)).reshape(kh * kw, cin, cout)
    w_taps = jnp.pad(w_taps, ((0, 0), (0, 0), (0, cout_pad - cout)))
    w_taps = w_taps.reshape(kt, k_depth, cout_pad).astype(jnp.bfloat16)

    scale_p = jnp.pad(scale, (0, cout_pad - cout))
    shift_p = jnp.pad(shift, (0, cout_pad - cout))
    sb = jnp.stack([scale_p, shift_p]).astype(jnp.float32)     # (2, Cout_pad)

    # ---- row-block tiling sized from the accumulator budget -------------------
    row_cap = max(8, acc_budget_bytes // (ct * 4))
    bh = _pick_row_block(h_out, w_out, row_cap)
    rows = bh * w_out
    grid = (n, nc, h_out // bh)                                # ci before hi: weights
                                                               # stay resident over hi

    def kernel(x_ref, w_ref, sb_ref, o_ref):
        # x_ref:  (1, Hp, Wp, Cin)   bf16, whole padded image (resident over ci/hi)
        # w_ref:  (kt, K, ct)        bf16
        # sb_ref: (2, ct)            f32 (row0 = BN scale, row1 = BN shift)
        # o_ref:  (1, rows, ct)      bf16, flat (h*w, cout) tile
        hi = pl.program_id(2)
        h0 = hi * bh
        acc = jnp.zeros((rows, ct), jnp.float32)
        for ti in range(kt):
            slices = []
            for ki in (range(kh) if fuse_all else [ti]):
                if sh == 1:
                    r = x_ref[0, pl.ds(h0 + ki, bh), :, :]             # (bh, Wp, Cin)
                else:
                    r = x_ref[0, pl.ds(h0 * sh + ki, bh, stride=sh), :, :]
                for kj in range(kw):
                    if sw == 1:
                        slices.append(r[:, kj:kj + w_out, :])          # (bh, Wo, Cin)
                    else:
                        slices.append(lax.slice_in_dim(
                            r, kj, kj + sw * (w_out - 1) + 1, stride=sw, axis=1))
            patch = slices[0] if len(slices) == 1 else jnp.concatenate(slices, -1)
            patch2d = patch.reshape(rows, k_depth)                     # (rows, K)
            acc = acc + jnp.dot(patch2d, w_ref[ti],
                                preferred_element_type=jnp.float32)
        y = jnp.maximum(acc * sb_ref[0:1, :] + sb_ref[1:2, :], 0.0)    # BN + ReLU
        o_ref[...] = y[None, :, :].astype(o_ref.dtype)

    # ---- VMEM sizing (double-buffered blocks + live values) -------------------
    xb = _vmem_block_bytes((1, hp, wp, cin), jnp.bfloat16)
    wb = _vmem_block_bytes((kt, k_depth, ct), jnp.bfloat16)
    sbb = _vmem_block_bytes((2, ct), jnp.float32)
    ob = _vmem_block_bytes((1, rows, ct), jnp.bfloat16)
    live = rows * ct * 4 + 3 * rows * max(k_depth, 128) * 2 + (2 << 20)
    needed = 2 * (xb + wb + sbb + ob) + live
    vmem_limit = int(min(100 << 20, max(32 << 20, needed + (16 << 20))))

    flops = 2 * n * h_out * w_out * kh * kw * cin * cout_pad
    bytes_accessed = (x_pad.size * 2 + n * w_taps.size * 2 + sb.size * 4
                      + n * h_out * w_out * cout_pad * 2)

    out = pl.pallas_call(
        kernel,
        out_shape=jax.ShapeDtypeStruct((n, h_out * w_out, cout_pad), jnp.bfloat16),
        grid=grid,
        in_specs=[
            pl.BlockSpec((1, hp, wp, cin), lambda ni, ci, hi: (ni, 0, 0, 0)),
            pl.BlockSpec((kt, k_depth, ct), lambda ni, ci, hi: (0, 0, ci)),
            pl.BlockSpec((2, ct), lambda ni, ci, hi: (0, ci)),
        ],
        out_specs=pl.BlockSpec((1, rows, ct), lambda ni, ci, hi: (ni, hi, ci)),
        compiler_params=pltpu.CompilerParams(
            dimension_semantics=("parallel", "parallel", "parallel"),
            vmem_limit_bytes=vmem_limit),
        cost_estimate=pl.CostEstimate(flops=flops, transcendentals=0,
                                      bytes_accessed=bytes_accessed),
    )(x_pad, w_taps, sb)

    # ---- single epilogue pass: unflatten, drop padded lanes, NCHW, f32 --------
    out = out.reshape(n, h_out, w_out, cout_pad)[..., :cout]
    return jnp.transpose(out, (0, 3, 1, 2)).astype(jnp.float32)


def _reference(x_nchw, weight, gamma, beta, running_mean, running_var,
               *, stride=(1, 1), padding=(1, 1), eps=1e-5):
    y = lax.conv_general_dilated(
        x_nchw, weight, window_strides=stride,
        padding=[(padding[0], padding[0]), (padding[1], padding[1])],
        dimension_numbers=("NCHW", "OIHW", "NCHW"))
    scale = (gamma / jnp.sqrt(running_var + eps)).reshape(1, -1, 1, 1)
    shift = (beta - running_mean * gamma / jnp.sqrt(running_var + eps)).reshape(1, -1, 1, 1)
    return jnp.maximum(y * scale + shift, 0.0)


if __name__ == "__main__":
    key = jax.random.PRNGKey(0)
    k_x, k_w, k_g, k_b, k_m, k_v = jax.random.split(key, 6)

    N, CIN, H, W = 2, 4, 16, 16
    COUT, KH, KW = 8, 3, 3          # kernel_size=3, stride=1, "same" padding=1

    x = jax.random.normal(k_x, (N, CIN, H, W), dtype=jnp.float32)
    weight = jax.random.normal(k_w, (COUT, CIN, KH, KW), dtype=jnp.float32) * 0.1
    gamma = 1.0 + 0.1 * jax.random.normal(k_g, (COUT,), dtype=jnp.float32)
    beta = 0.1 * jax.random.normal(k_b, (COUT,), dtype=jnp.float32)
    running_mean = 0.1 * jax.random.normal(k_m, (COUT,), dtype=jnp.float32)
    running_var = jnp.abs(1.0 + 0.1 * jax.random.normal(k_v, (COUT,), dtype=jnp.float32))

    out = conv_bn_act2d(x, weight, gamma, beta, running_mean, running_var,
                        stride=(1, 1), padding=(1, 1))
    out = jax.block_until_ready(out)

    ref = _reference(x, weight, gamma, beta, running_mean, running_var,
                     stride=(1, 1), padding=(1, 1))
    assert out.shape == (N, COUT, H, W), out.shape
    # bf16 inputs/weights/output (f32 accumulation + f32 BN epilogue) vs pure-f32
    # reference => relaxed tolerance.
    max_err = float(jnp.max(jnp.abs(out - ref)))
    assert jnp.allclose(out, ref, atol=5e-2, rtol=5e-2), f"mismatch, max_err={max_err}"

    print("KERNEL_OK")
</pallas_src>

<mosaic_0001>
module attributes {stable_mosaic.version = 11 : i64} {
  func.func @kernel(%arg0: i32, %arg1: i32, %arg2: i32, %arg3: memref<1x18x18x4xbf16, #tpu.memory_space<vmem>>, %arg4: memref<1x36x128xbf16, #tpu.memory_space<vmem>>, %arg5: memref<2x128xf32, #tpu.memory_space<vmem>>, %arg6: memref<1x256x128xbf16, #tpu.memory_space<vmem>>) attributes {dimension_semantics = [#tpu.dimension_semantics<parallel>, #tpu.dimension_semantics<parallel>, #tpu.dimension_semantics<parallel>], iteration_bounds = array<i64: 2, 1, 1>, scalar_prefetch = 0 : i64, scratch_operands = 0 : i64, tpu.core_type = #tpu.core_type<tc>, window_params = [{transform_indices = @transform_0, window_bounds = array<i64: 1, 18, 18, 4>}, {transform_indices = @transform_1, window_bounds = array<i64: 1, 36, 128>}, {transform_indices = @transform_2, window_bounds = array<i64: 2, 128>}, {transform_indices = @transform_3, window_bounds = array<i64: 1, 256, 128>}]} {
    %c16_i32 = arith.constant 16 : i32
    %0 = arith.muli %arg2, %c16_i32 : i32
    %cst = arith.constant 0.000000e+00 : f32
    %1 = vector.broadcast %cst : f32 to vector<256x128xf32>
    %c0_i32 = arith.constant 0 : i32
    %2 = arith.addi %0, %c0_i32 : i32
    %c0 = arith.constant 0 : index
    %3 = arith.index_cast %2 : i32 to index
    %c0_0 = arith.constant 0 : index
    %c0_1 = arith.constant 0 : index
    %4 = vector.load %arg3[%c0, %3, %c0_0, %c0_1] : memref<1x18x18x4xbf16, #tpu.memory_space<vmem>>, vector<1x16x18x4xbf16>
    %5 = vector.shape_cast %4 : vector<1x16x18x4xbf16> to vector<16x18x4xbf16>
    %6 = vector.extract_strided_slice %5 {offsets = [0, 0, 0], sizes = [16, 16, 4], strides = [1, 1, 1]} : vector<16x18x4xbf16> to vector<16x16x4xbf16>
    %7 = vector.extract_strided_slice %5 {offsets = [0, 1, 0], sizes = [16, 16, 4], strides = [1, 1, 1]} : vector<16x18x4xbf16> to vector<16x16x4xbf16>
    %8 = vector.extract_strided_slice %5 {offsets = [0, 2, 0], sizes = [16, 16, 4], strides = [1, 1, 1]} : vector<16x18x4xbf16> to vector<16x16x4xbf16>
    %c1_i32 = arith.constant 1 : i32
    %9 = arith.addi %0, %c1_i32 : i32
    %c0_2 = arith.constant 0 : index
    %10 = arith.index_cast %9 : i32 to index
    %c0_3 = arith.constant 0 : index
    %c0_4 = arith.constant 0 : index
    %11 = vector.load %arg3[%c0_2, %10, %c0_3, %c0_4] : memref<1x18x18x4xbf16, #tpu.memory_space<vmem>>, vector<1x16x18x4xbf16>
    %12 = vector.shape_cast %11 : vector<1x16x18x4xbf16> to vector<16x18x4xbf16>
    %13 = vector.extract_strided_slice %12 {offsets = [0, 0, 0], sizes = [16, 16, 4], strides = [1, 1, 1]} : vector<16x18x4xbf16> to vector<16x16x4xbf16>
    %14 = vector.extract_strided_slice %12 {offsets = [0, 1, 0], sizes = [16, 16, 4], strides = [1, 1, 1]} : vector<16x18x4xbf16> to vector<16x16x4xbf16>
    %15 = vector.extract_strided_slice %12 {offsets = [0, 2, 0], sizes = [16, 16, 4], strides = [1, 1, 1]} : vector<16x18x4xbf16> to vector<16x16x4xbf16>
    %c2_i32 = arith.constant 2 : i32
    %16 = arith.addi %0, %c2_i32 : i32
    %c0_5 = arith.constant 0 : index
    %17 = arith.index_cast %16 : i32 to index
    %c0_6 = arith.constant 0 : index
    %c0_7 = arith.constant 0 : index
    %18 = vector.load %arg3[%c0_5, %17, %c0_6, %c0_7] : memref<1x18x18x4xbf16, #tpu.memory_space<vmem>>, vector<1x16x18x4xbf16>
    %19 = vector.shape_cast %18 : vector<1x16x18x4xbf16> to vector<16x18x4xbf16>
    %20 = vector.extract_strided_slice %19 {offsets = [0, 0, 0], sizes = [16, 16, 4], strides = [1, 1, 1]} : vector<16x18x4xbf16> to vector<16x16x4xbf16>
    %21 = vector.extract_strided_slice %19 {offsets = [0, 1, 0], sizes = [16, 16, 4], strides = [1, 1, 1]} : vector<16x18x4xbf16> to vector<16x16x4xbf16>
    %22 = vector.extract_strided_slice %19 {offsets = [0, 2, 0], sizes = [16, 16, 4], strides = [1, 1, 1]} : vector<16x18x4xbf16> to vector<16x16x4xbf16>
    %23 = tpu.concatenate %6, %7, %8, %13, %14, %15, %20, %21, %22 in 2 : vector<16x16x4xbf16>, vector<16x16x4xbf16>, vector<16x16x4xbf16>, vector<16x16x4xbf16>, vector<16x16x4xbf16>, vector<16x16x4xbf16>, vector<16x16x4xbf16>, vector<16x16x4xbf16>, vector<16x16x4xbf16> -> vector<16x16x36xbf16>
    %24 = vector.shape_cast %23 : vector<16x16x36xbf16> to vector<256x36xbf16>
    %c0_8 = arith.constant 0 : index
    %c0_9 = arith.constant 0 : index
    %c0_10 = arith.constant 0 : index
    %25 = vector.load %arg4[%c0_8, %c0_9, %c0_10] : memref<1x36x128xbf16, #tpu.memory_space<vmem>>, vector<1x36x128xbf16>
    %26 = vector.shape_cast %25 : vector<1x36x128xbf16> to vector<36x128xbf16>
    %cst_11 = arith.constant dense<0.000000e+00> : vector<256x128xf32>
    %27 = tpu.matmul %24, %26, %cst_11 {dimension_numbers = #tpu.dot_dimension_numbers<[1], [0], [0], [1], [0, 0, 1, 1], [], []>} : vector<256x36xbf16>, vector<36x128xbf16>, vector<256x128xf32> -> vector<256x128xf32>
    %28 = arith.addf %1, %27 : vector<256x128xf32>
    %c0_12 = arith.constant 0 : index
    %c0_13 = arith.constant 0 : index
    %29 = vector.load %arg5[%c0_12, %c0_13] : memref<2x128xf32, #tpu.memory_space<vmem>>, vector<1x128xf32>
    %30 = vector.broadcast %29 : vector<1x128xf32> to vector<256x128xf32>
    %31 = arith.mulf %28, %30 : vector<256x128xf32>
    %c1 = arith.constant 1 : index
    %c0_14 = arith.constant 0 : index
    %32 = vector.load %arg5[%c1, %c0_14] : memref<2x128xf32, #tpu.memory_space<vmem>>, vector<1x128xf32>
    %33 = vector.broadcast %32 : vector<1x128xf32> to vector<256x128xf32>
    %34 = arith.addf %31, %33 : vector<256x128xf32>
    %cst_15 = arith.constant 0.000000e+00 : f32
    %35 = vector.broadcast %cst_15 : f32 to vector<256x128xf32>
    %36 = arith.maximumf %34, %35 : vector<256x128xf32>
    %37 = vector.shape_cast %36 : vector<256x128xf32> to vector<1x256x128xf32>
    %38 = arith.truncf %37 : vector<1x256x128xf32> to vector<1x256x128xbf16>
    %c0_16 = arith.constant 0 : index
    %c0_17 = arith.constant 0 : index
    %c0_18 = arith.constant 0 : index
    %39 = vector.load %arg6[%c0_16, %c0_17, %c0_18] : memref<1x256x128xbf16, #tpu.memory_space<vmem>>, vector<1x256x128xbf16>
    tpu.vector_store %arg6[%c0_16, %c0_17, %c0_18], %38 {strides = array<i32>} : memref<1x256x128xbf16, #tpu.memory_space<vmem>>, vector<1x256x128xbf16>,
    return
  }
  func.func @transform_0(%arg0: i32, %arg1: i32, %arg2: i32) -> (i32, i32, i32, i32) {
    %c0_i32 = arith.constant 0 : i32
    %c0_i32_0 = arith.constant 0 : i32
    %c0_i32_1 = arith.constant 0 : i32
    %c0_i32_2 = arith.constant 0 : i32
    return %arg0, %c0_i32, %c0_i32_0, %c0_i32_1 : i32, i32, i32, i32
  }
  func.func @transform_1(%arg0: i32, %arg1: i32, %arg2: i32) -> (i32, i32, i32) {
    %c0_i32 = arith.constant 0 : i32
    %c0_i32_0 = arith.constant 0 : i32
    %c0_i32_1 = arith.constant 0 : i32
    return %c0_i32, %c0_i32_0, %arg1 : i32, i32, i32
  }
  func.func @transform_2(%arg0: i32, %arg1: i32, %arg2: i32) -> (i32, i32) {
    %c0_i32 = arith.constant 0 : i32
    %c0_i32_0 = arith.constant 0 : i32
    return %c0_i32, %arg1 : i32, i32
  }
  func.func @transform_3(%arg0: i32, %arg1: i32, %arg2: i32) -> (i32, i32, i32) {
    %c0_i32 = arith.constant 0 : i32
    return %arg0, %arg2, %arg1 : i32, i32, i32
  }
}

</mosaic_0001>

<bundles_post_ra>
// kernel: tpu_custom_call.1
= control target key start
LH: loop header
LB: loop body
LE: loop exit
PB: predicated region body
PF: predicated region fallthrough
CT: control target
= control target key end

     0   :  { %8 = vsyncpa [#allocation3], 0  ;;  %s4615_s0 = inlined_call_operand.vmem [shape: bf16[2,18,18,4], index: 0, kind: input, shape index: {}]   ;;  %s4616_s1 = inlined_call_operand.vmem [shape: bf16[1,36,128], index: 1, kind: input, shape index: {}]   ;;  %s4617_s2 = inlined_call_operand.vmem [shape: f32[2,128], index: 2, kind: input, shape index: {}]   ;;  %s4618_s3 = inlined_call_operand.hbm [shape: bf16[2,256,128], index: 3, kind: output, shape index: {}]  }
   0x1   :  { %10 = vsyncpa [#allocation3 + $0x1], 0  ;;  %s3366_s12 = smov 0   ;;  %s3368_s13 = smov 0  }
   0x2   :  { %s3370_s14 = smov 0   ;;  %s3372_s15 = smov 0  }
   0x3   :  { %s3374_s16 = smov 0   ;;  %s3376_s17 = smov 0  }
   0x4 LB: > { %s2628_s18 = sadd.s32 4294967295, %s3334_s17   ;;  %s2629_s19 = sadd.s32 4294967294, %s3334_s17   ;;  %s3334_s17 = sphi %s3376_s17, %s16_s17   ;;  %s3330_s16 = sphi %s3374_s16, %s4625_s16   ;;  %s3326_s15 = sphi %s3372_s15, %s4624_s15   ;;  %s3322_s14 = sphi %s3370_s14, %s4623_s14   ;;  %s3318_s13 = sphi %s3368_s13, %s4622_s13   ;;  %s3314_s12 = sphi %s3366_s12, %s4621_s12  }
   0x5   : > { %s35_s20 = sadd.s32 1, %s3330_s16  ;;  %s124_s21 = sadd.s32 1, %s3322_s14 }
   0x6   : > { %p37_p0 = scmp.ge.s32.totalorder %s35_s20, 2  ;;  %p134_p1 = scmp.ne.s32.totalorder %s3322_s14, %s3318_s13 }
   0x7   : > { %p135_p2 = scmp.eq.s32.totalorder %s2628_s18, 1  ;;  %p140_p3 = scmp.ne.s32.totalorder %s3318_s13, %s3314_s12 }
   0x8   : > { %s4627_s20 = smov (%p37_p0, %s35_s20), 0  ;;  %p141_p5 = scmp.eq.s32.totalorder %s2629_s19, 1 }
   0x9   : > { %p3406_p4 = por %p135_p2, %p134_p1  ;;  %s117_s23 = ssub.s32 %s3330_s16, %s4627_s20 }
   0xa   : > { %p2634_p6 = scmp.ge.s32.totalorder %s3334_s17, 1  ;;  %p122_p7 = scmp.eq.s32.totalorder %s117_s23, 0 }
   0xb   : > { %p3413_p8 = por %p141_p5, %p140_p3  ;;  %p181_p9 = scmp.lt.s32.totalorder %s3334_s17, 3 }
   0xc   : > { %s3419_s25 = scalar_select %p122_p7, %s3322_s14, %s124_s21  }
   0xd   : > { %p182_p10 = pnand %p2634_p6, %p181_p9 }
   0xe   : > { %p213_p11 = scmp.lt.s32.totalorder (!%p182_p10), %s3326_s15, 1  ;;  %vm737_vm0 = vcmask (!%p182_p10), 1046528   ;;  %s3336_s4 = smov (!%p182_p10), 12   ;;  %vm512_vm1 = vsmask.f32 (!%p182_p10), 7424  ;;  %vm2063_vm2 = vcmask (!%p182_p10), 1041408  }
   0xf   : > { %185 = sbr.rel (%p182_p10) target bundleno = 635 (0x27b), region = 32  ;;  %s3337_s5 = smov (!%p182_p10), 8   ;;  %vm1746_vm3 = vcmask (!%p182_p10), 31744   ;;  %vm1779_vm4 = vcmask (!%p182_p10), 64512   ;;  %vm1812_vm5 = vcmask (!%p182_p10), 97280   ;;  %vm1845_vm6 = vcmask (!%p182_p10), 130048  }
  0x10   : > { %s3338_s6 = smov (!%p182_p10), 4   ;;  %s3339_s7 = smov (!%p182_p10), 16   ;;  %vm1878_vm7 = vcmask (!%p182_p10), 162816   ;;  %vm1911_vm8 = vcmask (!%p182_p10), 195584   ;;  %vm1944_vm9 = vcmask (!%p182_p10), 228352   ;;  %vm1977_vm10 = vcmask (!%p182_p10), 261120  }
  0x11   : > { %s3340_s8 = smov (!%p182_p10), 20   ;;  %s3341_s9 = smov (!%p182_p10), 24   ;;  %vm2030_vm11 = vcmask (!%p182_p10), 293888  }
  0x12   : > { %s3342_s10 = smov (!%p182_p10), 28   ;;  %s3343_s11 = smov (!%p182_p10), 32  }
  0x13   : > { %s3344_s23 = smov (!%p182_p10), [#allocation2]  }
  0x16   : > { %s214_s26 = scalar_select %p213_p11, %s3326_s15, 1 }
  0x18   : > { %s3080_s27 = smul.u32 216, %s214_s26  ;;  %s3260_s26 = sshll.u32 %s3344_s23, 4  ;;  %s3261_s26 = int_to_ptr.vmem [resolvable:$false] %s3260_s26 }
  0x1a   : > { %s3426_s30 = scalar_lea.vmem %s4615_s0, %s3080_s27  ;;  %s3262_s27 = scalar_lea.vmem %s3261_s26, 4096 }
  0x1b   : > { %v3429_v0 = vld [vmem:[%s3426_s30 + $0x6c] sm:$0xff]   ;;  %v3439_v2 = vld [vmem:[%s3426_s30 + $0x60] sm:$0xff]   ;;  %v3148_v3 = vld [vmem:[%s3426_s30 + $0x68] ss:$0 sps:$4 sm:$0x11]  }
  0x1c   : > { %v3432_v1 = vld [vmem:[%s3426_s30 + $0xc] sm:$0xff]   ;;  %914 = vrot.lane.b32.xlu1 %v3429_v0, %s3336_s4  ;;  %v3149_v4 = vld [vmem:[%s3426_s30] sm:$0xff]   ;;  %v1075_v5 = vshrl.u32 %v3429_v0, 16  ;;  %v762_v6 = vrot.slane %v3439_v2, 1  ;;  %v763_v7 = vrot.slane %v3148_v3, 1  ;;  %v3458_v36 = vld [vmem:[%s3426_s30 + $0x78] sm:$0xff]  }
  0x1d   : > { %898 = vrot.lane.b32.xlu0 %v3432_v1, %s3336_s4  ;;  %v3150_v8 = vld [vmem:[%s3426_s30 + $0x8] ss:$0 sps:$4 sm:$0x11]   ;;  %v3151_v9 = vld [vmem:[%s3426_s30 + $0x6c] sm:$0xff]   ;;  %v738_v10 = vrot.slane %v3149_v4, 1  ;;  %v514_v22 = vshrl.u32 %v3149_v4, 16 }
  0x1e   : > { %v3153_v11 = vld [vmem:[%s3426_s30 + $0xc] sm:$0xff]   ;;  %v764_v12 = vsel %vm737_vm0, %v762_v6, %v763_v7  ;;  %v739_v13 = vrot.slane %v3150_v8, 1  ;;  %v3152_v14 = vld [vmem:[%s3426_s30 + $0x74] ss:$0 sps:$4 sm:$0x11]   ;;  %v765_v15 = vrot.slane %v3151_v9, 1 }
  0x1f   : > { %v741_v16 = vrot.slane %v3153_v11, 1  ;;  %v766_v18 = vrot.slane %v3152_v14, 1  ;;  %v3154_v19 = vld [vmem:[%s3426_s30 + $0x14] ss:$0 sps:$4 sm:$0x11]   ;;  %v526_v20 = vshrl.u32 %v3153_v11, 16 }
  0x20   : > { %802 = vrot.lane.b32.xlu1 %v764_v12, %s3337_s5  ;;  %v740_v17 = vsel %vm737_vm0, %v738_v10, %v739_v13  ;;  %v528_v21 = vshll.u32 %v3153_v11, 16  ;;  %v516_v23 = vshll.u32 %v3149_v4, 16  ;;  %v742_v25 = vrot.slane %v3154_v19, 1  ;;  %v3157_v44 = vld [vmem:[%s3426_s30 + $0x74] ss:$0 sps:$4 sm:$0x11]  }
  0x21   : > { %786 = vrot.lane.b32.xlu0 %v740_v17, %s3337_s5  ;;  %v767_v24 = vsel %vm737_vm0, %v765_v15, %v766_v18  ;;  %v533_v26 = vshll.u32 %v3154_v19, 16  ;;  %v521_v27 = vshll.u32 %v3150_v8, 16  ;;  %v622_v30 = vshrl.u32 %v3151_v9, 16  ;;  %v3158_v49 = vld [vmem:[%s3426_s30 + $0x14] ss:$0 sps:$4 sm:$0x11]  }
  0x22   : > { %v530_v28 = vrot.slane %v528_v21, 1  ;;  %v518_v29 = vrot.slane %v516_v23, 1  ;;  %v624_v31 = vshll.u32 %v3151_v9, 16  ;;  %v743_v32 = vsel %vm737_vm0, %v741_v16, %v742_v25  ;;  %v3470_v52 = vld [vmem:[%s3426_s30 + $0x18] sm:$0xff]  }
  0x23   : > { %v535_v33 = vrot.slane %v533_v26, 1  ;;  %v523_v34 = vrot.slane %v521_v27, 1  ;;  %v629_v35 = vshll.u32 %v3152_v14, 16  ;;  %v610_v40 = vshrl.u32 %v3439_v2, 16  ;;  %v3500_v26 = vld [vmem:[%s3426_s30 + $0x78] sm:$0xff]  }
  0x24   : > { %804 = vrot.lane.b32.xlu1 %v767_v24, %s3337_s5  ;;  %v531_v37 = vor.u32 %v530_v28, %v526_v20  ;;  %v519_v38 = vor.u32 %v518_v29, %v514_v22  ;;  %v626_v39 = vrot.slane %v624_v31, 1  ;;  %v612_v42 = vshll.u32 %v3439_v2, 16  ;;  %v3159_v58 = vld [vmem:[%s3426_s30 + $0x80] ss:$0 sps:$4 sm:$0x11]  }
  0x25   : > { %788 = vrot.lane.b32.xlu0 %v743_v32, %s3337_s5  ;;  %v631_v41 = vrot.slane %v629_v35, 1  ;;  %v617_v43 = vshll.u32 %v3148_v3, 16  ;;  %v1077_v48 = vshll.u32 %v3429_v0, 16  ;;  %v1082_v53 = vshll.u32 %v3157_v44, 16  ;;  %v3520_v35 = vld [vmem:[%s3426_s30 + $0x24] sm:$0xff]  }
  0x26   : > { %v536_v45 = vsel %vm512_vm1, %v531_v37, %v535_v33  ;;  %v524_v46 = vsel %vm512_vm1, %v519_v38, %v523_v34  ;;  %v627_v47 = vor.u32 %v626_v39, %v622_v30  ;;  %v614_v50 = vrot.slane %v612_v42, 1  ;;  %v3160_v62 = vld [vmem:[%s3426_s30 + $0x20] ss:$0 sps:$4 sm:$0x11]   ;;  %v3515_v33 = vld [vmem:[%s3426_s30 + $0x84] sm:$0xff]  }
  0x27   : > { %v619_v51 = vrot.slane %v617_v43, 1  ;;  %v1079_v55 = vrot.slane %v1077_v48, 1  ;;  %v981_v56 = vshll.u32 %v3432_v1, 16  ;;  %v986_v57 = vshll.u32 %v3158_v49, 16 }
  0x28   : > { %707 = vrot.lane.b32.xlu1 %v536_v45, %s3338_s6  ;;  %v632_v54 = vsel %vm512_vm1, %v627_v47, %v631_v41  ;;  %v615_v59 = vor.u32 %v614_v50, %v610_v40  ;;  %v979_v60 = vshrl.u32 %v3432_v1, 16  ;;  %v1089_v61 = vshll.u32 %v3458_v36, 16  ;;  %v3512_v32 = vld [vmem:[%s3426_s30 + $0x80] ss:$0 sps:$4 sm:$0x11]   ;;  %v3544_v50 = vld [vmem:[%s3426_s30 + $0x78] sm:$0xff]  }
  0x29   : > { %705 = vrot.lane.b32.xlu0 %v524_v46, %s3338_s6  ;;  %v1084_v63 = vrot.slane %v1082_v53, 1  ;;  %v983_v2 = vrot.slane %v981_v56, 1  ;;  %v988_v4 = vrot.slane %v986_v57, 1  ;;  %v1087_v6 = vshrl.u32 %v3458_v36, 16 }
  0x2a   : > { %v620_v3 = vsel %vm512_vm1, %v615_v59, %v619_v51  ;;  %v993_v7 = vshll.u32 %v3470_v52, 16  ;;  %v1080_v8 = vor.u32 %v1079_v55, %v1075_v5  ;;  %v1091_v9 = vrot.slane %v1089_v61, 1  ;;  %v3551_v55 = vld [vmem:[%s3426_s30 + $0x18] sm:$0xff]  }
  0x2b   : > { %v1094_v10 = vshll.u32 %v3159_v58, 16  ;;  %v984_v11 = vor.u32 %v983_v2, %v979_v60  ;;  %v991_v12 = vshrl.u32 %v3470_v52, 16  ;;  %v998_v14 = vshll.u32 %v3160_v62, 16 }
  0x2c   : > { %723 = vrot.lane.b32.xlu1 %v632_v54, %s3338_s6  ;;  %v995_v13 = vrot.slane %v993_v7, 1  ;;  %v1085_v15 = vsel %vm512_vm1, %v1080_v8, %v1084_v63  ;;  %v1092_v16 = vor.u32 %v1091_v9, %v1087_v6  ;;  %v1226_v21 = vrot.slane %v3429_v0, 1  ;;  %v3561_v63 = vld [vmem:[%s3426_s30 + $0x20] ss:$0 sps:$4 sm:$0x11]  }
  0x2d   : > { %721 = vrot.lane.b32.xlu0 %v620_v3, %s3338_s6  ;;  %v1096_v17 = vrot.slane %v1094_v10, 1  ;;  %v989_v5 = vsel %vm512_vm1, %v984_v11, %v988_v4  ;;  %v1000_v19 = vrot.slane %v998_v14, 1  ;;  %v1227_v22 = vrot.slane %v3157_v44, 1  ;;  %v3534_v44 = vld [vmem:[%s3426_s30 + $0x8c] ss:$0 sps:$4 sm:$0x11]  }
  0x2e   : > { %v996_v18 = vor.u32 %v995_v13, %v991_v12  ;;  %v1202_v24 = vrot.slane %v3432_v1, 1  ;;  %v1203_v25 = vrot.slane %v3158_v49, 1  ;;  %v1229_v28 = vrot.slane %v3458_v36, 1  ;;  %v3509_v1 = vld [vmem:[%s3426_s30 + $0x18] sm:$0xff]  }
  0x2f   : > { %v1097_v20 = vsel %vm512_vm1, %v1092_v16, %v1096_v17  ;;  %v1228_v27 = vsel %vm737_vm0, %v1226_v21, %v1227_v22  ;;  %v1230_v0 = vrot.slane %v3159_v58, 1  ;;  %v1205_v30 = vrot.slane %v3470_v52, 1  ;;  %v3541_v49 = vld [vmem:[%s3426_s30 + $0x2c] ss:$0 sps:$4 sm:$0x11]  }
  0x30   : > { %916 = vrot.lane.b32.xlu1 %v3458_v36, %s3336_s4  ;;  %v1001_v23 = vsel %vm512_vm1, %v996_v18, %v1000_v19  ;;  %v1204_v29 = vsel %vm737_vm0, %v1202_v24, %v1203_v25  ;;  %v1206_v31 = vrot.slane %v3160_v62, 1  ;;  %v1541_v34 = vshll.u32 %v3500_v26, 16  ;;  %v3523_v36 = vld [vmem:[%s3426_s30 + $0x20] ss:$0 sps:$4 sm:$0x11]   ;;  %v3581_v18 = vld [vmem:[%s3426_s30 + $0x84] sm:$0xff]  }
  0x31   : > { %900 = vrot.lane.b32.xlu0 %v3470_v52, %s3336_s4  ;;  %v1231_v37 = vsel %vm737_vm0, %v1229_v28, %v1230_v0  ;;  %v1445_v39 = vshll.u32 %v3509_v1, 16  ;;  %v1539_v40 = vshrl.u32 %v3500_v26, 16  ;;  %v1546_v42 = vshll.u32 %v3512_v32, 16  ;;  %v3558_v62 = vld [vmem:[%s3426_s30 + $0x80] ss:$0 sps:$4 sm:$0x11]  }
  0x32   : > { %v1207_v38 = vsel %vm737_vm0, %v1205_v30, %v1206_v31  ;;  %v1543_v41 = vrot.slane %v1541_v34, 1  ;;  %v1450_v43 = vshll.u32 %v3523_v36, 16  ;;  %v1553_v45 = vshll.u32 %v3515_v33, 16  ;;  %v3174_v28 = vld [vmem:[%s3426_s30 + $0x8c] ss:$0 sps:$4 sm:$0x11]  }
  0x33   : > { %v1457_v46 = vshll.u32 %v3520_v35, 16  ;;  %v1443_v47 = vshrl.u32 %v3509_v1, 16  ;;  %v1447_v48 = vrot.slane %v1445_v39, 1  ;;  %v1548_v52 = vrot.slane %v1546_v42, 1 }
  0x34   : > { %1186 = vrot.lane.b32.xlu1 %v1085_v15, %s3339_s7  ;;  %v1544_v51 = vor.u32 %v1543_v41, %v1539_v40  ;;  %v1551_v53 = vshrl.u32 %v3515_v33, 16  ;;  %v1455_v54 = vshrl.u32 %v3520_v35, 16  ;;  %v1452_v56 = vrot.slane %v1450_v43, 1  ;;  %v3176_v31 = vld [vmem:[%s3426_s30 + $0x2c] ss:$0 sps:$4 sm:$0x11]  }
  0x35   : > { %1170 = vrot.lane.b32.xlu0 %v989_v5, %s3339_s7  ;;  %v1555_v57 = vrot.slane %v1553_v45, 1  ;;  %v1558_v58 = vshll.u32 %v3534_v44, 16  ;;  %v1459_v59 = vrot.slane %v1457_v46, 1  ;;  %v1448_v60 = vor.u32 %v1447_v48, %v1443_v47 }
  0x36   : > { %v1462_v61 = vshll.u32 %v3541_v49, 16  ;;  %v1549_v2 = vsel %vm512_vm1, %v1544_v51, %v1548_v52  ;;  %v636_v6 = vshll.u32 %v3544_v50, 16  ;;  %v540_v10 = vshll.u32 %v3551_v55, 16 }
  0x37   : > { %v1556_v3 = vor.u32 %v1555_v57, %v1551_v53  ;;  %v1560_v4 = vrot.slane %v1558_v58, 1  ;;  %v1453_v7 = vsel %vm512_vm1, %v1448_v60, %v1452_v56  ;;  %v1460_v8 = vor.u32 %v1459_v59, %v1455_v54  ;;  %v3620_v58 = vld [vmem:[%s3426_s30 + $0x84] sm:$0xff]  }
  0x38   : > { %1188 = vrot.lane.b32.xlu1 %v1097_v20, %s3339_s7  ;;  %v1464_v9 = vrot.slane %v1462_v61, 1  ;;  %v1690_v11 = vrot.slane %v3500_v26, 1  ;;  %v1691_v12 = vrot.slane %v3512_v32, 1  ;;  %v641_v13 = vshll.u32 %v3558_v62, 16 }
  0x39   : > { %1172 = vrot.lane.b32.xlu0 %v1001_v23, %s3339_s7  ;;  %v545_v14 = vshll.u32 %v3561_v63, 16  ;;  %v1561_v15 = vsel %vm512_vm1, %v1556_v3, %v1560_v4  ;;  %v1666_v16 = vrot.slane %v3509_v1, 1  ;;  %v634_v17 = vshrl.u32 %v3544_v50, 16  ;;  %v3587_v23 = vld [vmem:[%s3426_s30 + $0x24] sm:$0xff]   ;;  %v3637_v4 = vld [vmem:[%s3426_s30 + $0x90] sm:$0xff]  }
  0x3a   : > { %v638_v5 = vrot.slane %v636_v6, 1  ;;  %v1465_v19 = vsel %vm512_vm1, %v1460_v8, %v1464_v9  ;;  %v1667_v20 = vrot.slane %v3523_v36, 1  ;;  %v538_v21 = vshrl.u32 %v3551_v55, 16 }
  0x3b   : > { %v542_v22 = vrot.slane %v540_v10, 1  ;;  %v643_v24 = vrot.slane %v641_v13, 1  ;;  %v547_v25 = vrot.slane %v545_v14, 1  ;;  %v648_v0 = vshll.u32 %v3581_v18, 16  ;;  %v3647_v10 = vld [vmem:[%s3426_s30 + $0x30] sm:$0xff]  }
  0x3c   : > { %1266 = vrot.lane.b32.xlu1 %v1228_v27, %s3340_s8  ;;  %v639_v27 = vor.u32 %v638_v5, %v634_v17  ;;  %v1693_v32 = vrot.slane %v3515_v33, 1  ;;  %v1694_v34 = vrot.slane %v3534_v44, 1  ;;  %v1669_v36 = vrot.slane %v3520_v35, 1 }
  0x3d   : > { %1250 = vrot.lane.b32.xlu0 %v1204_v29, %s3340_s8  ;;  %v1668_v29 = vsel %vm737_vm0, %v1666_v16, %v1667_v20  ;;  %v543_v30 = vor.u32 %v542_v22, %v538_v21  ;;  %v646_v39 = vshrl.u32 %v3581_v18, 16  ;;  %v650_v40 = vrot.slane %v648_v0, 1  ;;  %v3657_v16 = vld [vmem:[%s3426_s30 + $0x98] ss:$0 sps:$4 sm:$0x11]  }
  0x3e   : > { %v653_v41 = vshll.u32 %v3174_v28, 16  ;;  %v550_v43 = vshrl.u32 %v3587_v23, 16  ;;  %v768_v52 = vrot.slane %v3544_v50, 1  ;;  %v769_v53 = vrot.slane %v3558_v62, 1  ;;  %v3628_v62 = vld [vmem:[%s3426_s30 + $0x24] sm:$0xff]  }
  0x3f   : > { %v548_v42 = vsel %vm512_vm1, %v543_v30, %v547_v25  ;;  %v651_v44 = vor.u32 %v650_v40, %v646_v39  ;;  %v744_v56 = vrot.slane %v3551_v55, 1  ;;  %v745_v57 = vrot.slane %v3561_v63, 1  ;;  %v3212_v30 = vld [vmem:[%s4616_s1 + $0x8] sm:$0xff]  }
  0x40   : > { %1268 = vrot.lane.b32.xlu1 %v1231_v37, %s3340_s8  ;;  %v1670_v37 = vrot.slane %v3541_v49, 1  ;;  %v655_v46 = vrot.slane %v653_v41, 1  ;;  %v770_v59 = vsel %vm737_vm0, %v768_v52, %v769_v53  ;;  %v771_v50 = vrot.slane %v3581_v18, 1 }
  0x41   : > { %1252 = vrot.lane.b32.xlu0 %v1207_v38, %s3340_s8  ;;  %v644_v38 = vsel %vm512_vm1, %v639_v27, %v643_v24  ;;  %v772_v60 = vrot.slane %v3174_v28, 1  ;;  %v747_v61 = vrot.slane %v3587_v23, 1  ;;  %v746_v55 = vsel %vm737_vm0, %v744_v56, %v745_v57  ;;  %v3716_v57 = vld [vmem:[%s3426_s30 + $0x9c] sm:$0xff]  }
  0x42   : > { %v1671_v47 = vsel %vm737_vm0, %v1669_v36, %v1670_v37  ;;  %v656_v51 = vsel %vm512_vm1, %v651_v44, %v655_v46  ;;  %v748_v63 = vrot.slane %v3176_v31, 1  ;;  %v1101_v3 = vshll.u32 %v3620_v58, 16 }
  0x43   : > { %v773_v6 = vsel %vm737_vm0, %v771_v50, %v772_v60  ;;  %v1005_v8 = vshll.u32 %v3628_v62, 16  ;;  %v1003_v14 = vshrl.u32 %v3628_v62, 16  ;;  %v1113_v17 = vshll.u32 %v3637_v4, 16  ;;  %v3723_v50 = vld [vmem:[%s3426_s30 + $0x3c] sm:$0xff]  }
  0x44   : > { %1378 = vrot.lane.b32.xlu1 %v3500_v26, %s3341_s9  ;;  %v1692_v26 = vsel %vm737_vm0, %v1690_v11, %v1691_v12  ;;  %v749_v9 = vsel %vm737_vm0, %v747_v61, %v748_v63  ;;  %v1099_v11 = vshrl.u32 %v3620_v58, 16  ;;  %v1103_v12 = vrot.slane %v1101_v3, 1  ;;  %v3730_v63 = vld [vmem:[%s3426_s30 + $0xa4] ss:$0 sps:$4 sm:$0x11]  }
  0x45   : > { %1362 = vrot.lane.b32.xlu0 %v3509_v1, %s3341_s9  ;;  %v552_v1 = vshll.u32 %v3587_v23, 16  ;;  %v1007_v5 = vrot.slane %v1005_v8, 1  ;;  %v1017_v20 = vshll.u32 %v3647_v10, 16  ;;  %v1111_v21 = vshrl.u32 %v3637_v4, 16 }
  0x46   : > { %v1015_v22 = vshrl.u32 %v3647_v10, 16  ;;  %v1104_v23 = vor.u32 %v1103_v12, %v1099_v11  ;;  %v1115_v25 = vrot.slane %v1113_v17, 1  ;;  %v1232_v39 = vrot.slane %v3620_v58, 1  ;;  %v3743_v11 = vld [vmem:[%s3426_s30 + $0x90] sm:$0xff]  }
  0x47   : > { %v554_v45 = vrot.slane %v552_v1, 1  ;;  %v1008_v27 = vor.u32 %v1007_v5, %v1003_v14  ;;  %v1019_v0 = vrot.slane %v1017_v20, 1  ;;  %v1235_v44 = vrot.slane %v3637_v4, 1  ;;  %v3755_v20 = vld [vmem:[%s3426_s30 + $0x98] ss:$0 sps:$4 sm:$0x11]  }
  0x48   : > { %1380 = vrot.lane.b32.xlu1 %v3515_v33, %s3341_s9  ;;  %v557_v33 = vshll.u32 %v3176_v31, 16  ;;  %v1116_v1 = vor.u32 %v1115_v25, %v1111_v21  ;;  %v1236_v46 = vrot.slane %v3657_v16, 1  ;;  %v1481_v8 = vshll.u32 %v3723_v50, 16 }
  0x49   : > { %1364 = vrot.lane.b32.xlu0 %v3520_v35, %s3341_s9  ;;  %v1695_v35 = vsel %vm737_vm0, %v1693_v32, %v1694_v34  ;;  %v555_v48 = vor.u32 %v554_v45, %v550_v43  ;;  %v1020_v36 = vor.u32 %v1019_v0, %v1015_v22  ;;  %v3692_v45 = vld [vmem:[%s3426_s30 + $0x90] sm:$0xff]   ;;  %v1575_v12 = vshrl.u32 %v3716_v57, 16 }
  0x4a   : > { %v559_v49 = vrot.slane %v557_v33, 1  ;;  %v3215_v33 = vld [vmem:[%s4616_s1 + $0x10] ss:$0 sps:$4 sm:$0x33]   ;;  %v1565_v53 = vshll.u32 %v3692_v45, 16  ;;  %v1237_v56 = vsel %vm737_vm0, %v1235_v44, %v1236_v46  ;;  %v1563_v61 = vshrl.u32 %v3692_v45, 16 }
  0x4b   : > { %v2065_v52 = vsel %vm2063_vm2, %v3215_v33, 0  ;;  %v1582_v14 = vshll.u32 %v3730_v63, 16  ;;  %v1479_v5 = vshrl.u32 %v3723_v50, 16  ;;  %v660_v25 = vshll.u32 %v3743_v11, 16 }
  0x4c   : > { %1650 = vrot.lane.b32.xlu1 %v1549_v2, %s3342_s10  ;;  %v560_v54 = vsel %vm512_vm1, %v555_v48, %v559_v49  ;;  %v3632_v2 = vld [vmem:[%s3426_s30 + $0x8c] ss:$0 sps:$4 sm:$0x11]   ;;  %v1211_v48 = vrot.slane %v3647_v10, 1 }
  0x4d   : > { %1634 = vrot.lane.b32.xlu0 %v1453_v7, %s3342_s10  ;;  %v3642_v7 = vld [vmem:[%s3426_s30 + $0x2c] ss:$0 sps:$4 sm:$0x11]   ;;  %v1106_v13 = vshll.u32 %v3632_v2, 16  ;;  %v1233_v40 = vrot.slane %v3632_v2, 1 }
  0x4e   : > { %v1010_v18 = vshll.u32 %v3642_v7, 16  ;;  %v1209_v43 = vrot.slane %v3642_v7, 1  ;;  %v3792_v44 = vld [vmem:[%s3426_s30 + $0xa4] ss:$0 sps:$4 sm:$0x11]  }
  0x4f   : > { %v1108_v24 = vrot.slane %v1106_v13, 1 }
  0x50   : > { %1652 = vrot.lane.b32.xlu1 %v1561_v15, %s3342_s10  ;;  %v3209_v15 = vld [vmem:[%s4616_s1] sm:$0xff]   ;;  %v1012_v28 = vrot.slane %v1010_v18, 1  ;;  %v1483_v18 = vrot.slane %v1481_v8, 1 }
  0x51   : > { %1636 = vrot.lane.b32.xlu0 %v1465_v19, %s3342_s10  ;;  %3034 = vmatprep.subr.bf16.mxu0 %v3209_v15  ;;  %v3663_v19 = vld [vmem:[%s3426_s30 + $0x38] ss:$0 sps:$4 sm:$0x11]   ;;  %v1109_v31 = vsel %vm512_vm1, %v1104_v23, %v1108_v24  ;;  %v1584_v23 = vrot.slane %v1582_v14, 1 }
  0x52   : > { %3072 = vmatprep.subr.bf16.mxu1 %v3209_v15  ;;  %3035 = vmatpush3.bf16.msra.mxu0 %v3209_v15  ;;  %v1013_v34 = vsel %vm512_vm1, %v1008_v27, %v1012_v28  ;;  %v1212_v49 = vrot.slane %v3663_v19, 1  ;;  %v1484_v27 = vor.u32 %v1483_v18, %v1479_v5  ;;  %v3765_v28 = vld [vmem:[%s3426_s30 + $0x38] ss:$0 sps:$4 sm:$0x11]   ;;  %v774_v18 = vrot.slane %v3743_v11, 1 }
  0x53   : > { %3075 = vmatpush3.bf16.msra.mxu1 %v3209_v15  ;;  %3036 = vmatprep.subr.bf16.mxu0 %v3212_v30 }
  0x54   : > { %1730 = vrot.lane.b32.xlu1 %v1692_v26, %s3343_s11  ;;  %v1118_v26 = vshll.u32 %v3657_v16, 16  ;;  %3073 = vmatprep.subr.bf16.mxu1 %v3212_v30 }
  0x55   : > { %1714 = vrot.lane.b32.xlu0 %v1668_v29, %s3343_s11  ;;  %v1022_v29 = vshll.u32 %v3663_v19, 16  ;;  %v3752_v19 = vld [vmem:[%s3426_s30 + $0x30] sm:$0xff]  }
  0x56   : > { %v1120_v32 = vrot.slane %v1118_v26, 1  ;;  %3037 = vmatpush3.bf16.msra.mxu0 %v3212_v30  ;;  %v564_v0 = vshll.u32 %v3752_v19, 16 }
  0x57   : > { %v1024_v37 = vrot.slane %v1022_v29, 1  ;;  %3076 = vmatpush3.bf16.msra.mxu1 %v3212_v30  ;;  %3078 = vmatprep.subr.msk.bf16.mxu0 %vm2063_vm2, %v3215_v33  ;;  %v1696_v30 = vrot.slane %v3692_v45, 1 }
  0x58   : > { %725 = vrot.lane.b32.xlu1 %v644_v38, %s3338_s6  ;;  %v1121_v38 = vsel %vm512_vm1, %v1116_v1, %v1120_v32  ;;  %3079 = vmatprep.subr.msk.bf16.mxu1 %vm2063_vm2, %v3215_v33  ;;  %v3773_v1 = vld [vmem:[%s3426_s30 + $0x9c] sm:$0xff]   ;;  %v569_v33 = vshll.u32 %v3765_v28, 16 }
  0x59   : > { %709 = vrot.lane.b32.xlu0 %v548_v42, %s3338_s6  ;;  %v1025_v41 = vsel %vm512_vm1, %v1020_v36, %v1024_v37  ;;  %v1208_v42 = vrot.slane %v3628_v62, 1  ;;  %v658_v36 = vshrl.u32 %v3743_v11, 16  ;;  %v665_v37 = vshll.u32 %v3755_v20, 16 }
  0x5a   : > { %3039 = vmatpush3.bf16.msra.mxu0 %v2065_v52 }
  0x5b   : > { %3077 = vmatpush3.bf16.msra.mxu1 %v2065_v52 }
  0x5c   : > { %1732 = vrot.lane.b32.xlu1 %v1695_v35, %s3343_s11  ;;  %v1234_v35 = vsel %vm737_vm0, %v1232_v39, %v1233_v40 }
  0x5d   : > { %1716 = vrot.lane.b32.xlu0 %v1671_v47, %s3343_s11  ;;  %v1210_v47 = vsel %vm737_vm0, %v1208_v42, %v1209_v43  ;;  %v562_v42 = vshrl.u32 %v3752_v19, 16 }
  0x60   : > { %727 = vrot.lane.b32.xlu1 %v656_v51, %s3338_s6  ;;  %v3706_v51 = vld [vmem:[%s3426_s30 + $0x30] sm:$0xff]  }
  0x61   : > { %711 = vrot.lane.b32.xlu0 %v560_v54, %s3338_s6  ;;  %v3711_v54 = vld [vmem:[%s3426_s30 + $0x98] ss:$0 sps:$4 sm:$0x11]   ;;  %v1469_v60 = vshll.u32 %v3706_v51, 16  ;;  %v1467_v2 = vshrl.u32 %v3706_v51, 16  ;;  %v1672_v32 = vrot.slane %v3706_v51, 1 }
  0x63   : > { %v1471_v7 = vrot.slane %v1469_v60, 1  ;;  %v1700_v60 = vrot.slane %v3730_v63, 1 }
  0x64   : > { %806 = vrot.lane.b32.xlu1 %v770_v59, %s3337_s5  ;;  %v1213_v59 = vsel %vm737_vm0, %v1211_v48, %v1212_v49  ;;  %v672_v49 = vshll.u32 %v3773_v1, 16 }
  0x65   : > { %790 = vrot.lane.b32.xlu0 %v746_v55, %s3337_s5  ;;  %v1570_v55 = vshll.u32 %v3711_v54, 16  ;;  %v1472_v16 = vor.u32 %v1471_v7, %v1467_v2 }
  0x68   : > { %808 = vrot.lane.b32.xlu1 %v773_v6, %s3337_s5  ;;  %v3737_v6 = vld [vmem:[%s3426_s30 + $0x44] ss:$0 sps:$4 sm:$0x11]  }
  0x69   : > { %792 = vrot.lane.b32.xlu0 %v749_v9, %s3337_s5  ;;  %v1486_v15 = vshll.u32 %v3737_v6, 16 }
  0x6b   : > { %v1488_v24 = vrot.slane %v1486_v15, 1 }
  0x6c   : > { %918 = vrot.lane.b32.xlu1 %v3620_v58, %s3336_s4  ;;  %v3719_v58 = vld [vmem:[%s3426_s30 + $0x38] ss:$0 sps:$4 sm:$0x11]  }
  0x6d   : > { %902 = vrot.lane.b32.xlu0 %v3628_v62, %s3336_s4  ;;  %v1567_v62 = vrot.slane %v1565_v53, 1  ;;  %v1474_v3 = vshll.u32 %v3719_v58, 16  ;;  %v1489_v43 = vsel %vm512_vm1, %v1484_v27, %v1488_v24  ;;  %v750_v24 = vrot.slane %v3752_v19, 1  ;;  %v3844_v27 = vld [vmem:[%s3426_s30 + $0x9c] sm:$0xff]  }
  0x6e   : > { %v3851_v19 = vld [vmem:[%s3426_s30 + $0x3c] sm:$0xff]  }
  0x6f   : > { %v1568_v9 = vor.u32 %v1567_v62, %v1563_v61  ;;  %v1476_v17 = vrot.slane %v1474_v3, 1  ;;  %v1675_v61 = vrot.slane %v3723_v50, 1  ;;  %v670_v62 = vshrl.u32 %v3773_v1, 16 }
  0x70   : > { %920 = vrot.lane.b32.xlu1 %v3637_v4, %s3336_s4  ;;  %v1577_v4 = vshll.u32 %v3716_v57, 16  ;;  %v674_v3 = vrot.slane %v672_v49, 1 }
  0x71   : > { %904 = vrot.lane.b32.xlu0 %v3647_v10, %s3336_s4  ;;  %v1572_v10 = vrot.slane %v1570_v55, 1  ;;  %v1477_v26 = vsel %vm512_vm1, %v1472_v16, %v1476_v17 }
  0x72   : > { %v1579_v13 = vrot.slane %v1577_v4, 1  ;;  %v677_v4 = vshll.u32 %v3792_v44, 16 }
  0x73   : > { %v1573_v21 = vsel %vm512_vm1, %v1568_v9, %v1572_v10 }
  0x74   : > { %1190 = vrot.lane.b32.xlu1 %v1109_v31, %s3339_s7  ;;  %v1580_v22 = vor.u32 %v1579_v13, %v1575_v12  ;;  %v1697_v31 = vrot.slane %v3711_v54, 1  ;;  %v571_v54 = vrot.slane %v569_v33, 1  ;;  %v675_v12 = vor.u32 %v674_v3, %v670_v62 }
  0x75   : > { %1174 = vrot.lane.b32.xlu0 %v1013_v34, %s3339_s7  ;;  %v1673_v34 = vrot.slane %v3719_v58, 1  ;;  %v679_v13 = vrot.slane %v677_v4, 1 }
  0x76   : > { %v1585_v40 = vsel %vm512_vm1, %v1580_v22, %v1584_v23 }
  0x77   : > { %v1674_v52 = vsel %vm737_vm0, %v1672_v32, %v1673_v34  ;;  %v680_v5 = vsel %vm512_vm1, %v675_v12, %v679_v13 }
  0x78   : > { %1192 = vrot.lane.b32.xlu1 %v1121_v38, %s3339_s7  ;;  %v3781_v38 = vld [vmem:[%s3426_s30 + $0x3c] sm:$0xff]  }
  0x79   : > { %1176 = vrot.lane.b32.xlu0 %v1025_v41, %s3339_s7  ;;  %v662_v41 = vrot.slane %v660_v25, 1  ;;  %v574_v63 = vshrl.u32 %v3781_v38, 16  ;;  %v751_v25 = vrot.slane %v3765_v28, 1 }
  0x7b   : > { %v663_v48 = vor.u32 %v662_v41, %v658_v36  ;;  %v1029_v41 = vshll.u32 %v3851_v19, 16 }
  0x7c   : > { %1270 = vrot.lane.b32.xlu1 %v1234_v35, %s3340_s8  ;;  %v667_v35 = vrot.slane %v665_v37, 1  ;;  %v3865_v37 = vld [vmem:[%s3426_s30 + $0xa8] sm:$0xff]  }
  0x7d   : > { %1254 = vrot.lane.b32.xlu0 %v1210_v47, %s3340_s8  ;;  %v1698_v47 = vsel %vm737_vm0, %v1696_v30, %v1697_v31  ;;  %v752_v30 = vsel %vm737_vm0, %v750_v24, %v751_v25  ;;  %v753_v31 = vrot.slane %v3781_v38, 1  ;;  %v1031_v49 = vrot.slane %v1029_v41, 1  ;;  %v3924_v24 = vld [vmem:[%s3426_s30 + $0xa8] sm:$0xff]   ;;  %v3942_v41 = vld [vmem:[%s3426_s30 + $0xb0] ss:$0 sps:$4 sm:$0x11]  }
  0x7e   : > { %v668_v2 = vsel %vm512_vm1, %v663_v48, %v667_v35  ;;  %v1123_v35 = vshrl.u32 %v3844_v27, 16  ;;  %v1135_v62 = vshrl.u32 %v3865_v37, 16 }
  0x80   : > { %1272 = vrot.lane.b32.xlu1 %v1237_v56, %s3340_s8  ;;  %v576_v56 = vshll.u32 %v3781_v38, 16 }
  0x81   : > { %1256 = vrot.lane.b32.xlu0 %v1213_v59, %s3340_s8  ;;  %v1699_v59 = vrot.slane %v3716_v57, 1 }
  0x83   : > { %v1701_v10 = vsel %vm737_vm0, %v1699_v59, %v1700_v60 }
  0x84   : > { %1382 = vrot.lane.b32.xlu1 %v3692_v45, %s3341_s9  ;;  %v566_v45 = vrot.slane %v564_v0, 1  ;;  %v778_v0 = vrot.slane %v3792_v44, 1 }
  0x85   : > { %1366 = vrot.lane.b32.xlu0 %v3706_v51, %s3341_s9  ;;  %v3800_v51 = vld [vmem:[%s3426_s30 + $0x44] ss:$0 sps:$4 sm:$0x11]  }
  0x86   : > { %v567_v53 = vor.u32 %v566_v45, %v562_v42  ;;  %v581_v7 = vshll.u32 %v3800_v51, 16  ;;  %v754_v32 = vrot.slane %v3800_v51, 1  ;;  %v3878_v45 = vld [vmem:[%s3426_s30 + $0x44] ss:$0 sps:$4 sm:$0x11]  }
  0x87   : > { %v3888_v51 = vld [vmem:[%s3426_s30 + $0xb0] ss:$0 sps:$4 sm:$0x11]  }
  0x88   : > { %1384 = vrot.lane.b32.xlu1 %v3716_v57, %s3341_s9  ;;  %v572_v8 = vsel %vm512_vm1, %v567_v53, %v571_v54  ;;  %v1676_v57 = vrot.slane %v3737_v6, 1  ;;  %v583_v14 = vrot.slane %v581_v7, 1  ;;  %v755_v42 = vsel %vm737_vm0, %v753_v31, %v754_v32 }
  0x89   : > { %1368 = vrot.lane.b32.xlu0 %v3723_v50, %s3341_s9  ;;  %v578_v50 = vrot.slane %v576_v56, 1  ;;  %v1034_v54 = vshll.u32 %v3878_v45, 16  ;;  %v3895_v56 = vld [vmem:[%s3426_s30 + $0x50] ss:$0 sps:$4 sm:$0x11]   ;;  %v1142_v7 = vshll.u32 %v3888_v51, 16 }
  0x8a   : > { %v1677_v16 = vsel %vm737_vm0, %v1675_v61, %v1676_v57  ;;  %v1214_v31 = vrot.slane %v3851_v19, 1  ;;  %v1215_v32 = vrot.slane %v3878_v45, 1 }
  0x8b   : > { %v579_v6 = vor.u32 %v578_v50, %v574_v63  ;;  %v1036_v57 = vrot.slane %v1034_v54, 1  ;;  %v3965_v54 = vld [vmem:[%s3426_s30 + $0xb4] sm:$0xff]  }
  0x8c   : > { %1654 = vrot.lane.b32.xlu1 %v1573_v21, %s3342_s10  ;;  %v775_v21 = vrot.slane %v3755_v20, 1  ;;  %v777_v20 = vrot.slane %v3773_v1, 1  ;;  %v1125_v1 = vshll.u32 %v3844_v27, 16 }
  0x8d   : > { %1638 = vrot.lane.b32.xlu0 %v1477_v26, %s3342_s10  ;;  %v584_v23 = vsel %vm512_vm1, %v579_v6, %v583_v14 }
  0x8e   : > { %v3768_v29 = vpop.permute.xlu1 %914  ;;  %v776_v11 = vsel %vm737_vm0, %v774_v18, %v775_v21  ;;  %v779_v36 = vsel %vm737_vm0, %v777_v20, %v778_v0  ;;  %v1127_v44 = vrot.slane %v1125_v1, 1  ;;  %v3936_v1 = vld [vmem:[%s3426_s30 + $0x48] sm:$0xff]  }
  0x8f   : > { %v3784_v39 = vpop.permute.xlu0 %898 }
  0x90   : > { %1656 = vrot.lane.b32.xlu1 %v1585_v40, %s3342_s10  ;;  %v3868_v40 = vld [vmem:[%s3426_s30 + $0xa4] ss:$0 sps:$4 sm:$0x11]   ;;  %v1128_v61 = vor.u32 %v1127_v44, %v1123_v35  ;;  %v1216_v35 = vsel %vm737_vm0, %v1214_v31, %v1215_v32 }
  0x91   : > { %1640 = vrot.lane.b32.xlu0 %v1489_v43, %s3342_s10  ;;  %v3875_v43 = vld [vmem:[%s3426_s30 + $0x48] sm:$0xff]   ;;  %v1130_v48 = vshll.u32 %v3868_v40, 16  ;;  %v1239_v20 = vrot.slane %v3868_v40, 1  ;;  %v1241_v40 = vrot.slane %v3865_v37, 1 }
  0x92   : > { %v3795_v46 = vpop.permute.xlu1 %802  ;;  %v1041_v59 = vshll.u32 %v3875_v43, 16  ;;  %v1039_v63 = vshrl.u32 %v3875_v43, 16  ;;  %v1217_v44 = vrot.slane %v3875_v43, 1 }
  0x93   : > { %v3804_v58 = vpop.permute.xlu0 %786 }
  0x94   : > { %1734 = vrot.lane.b32.xlu1 %v1698_v47, %s3343_s11  ;;  %v1027_v47 = vshrl.u32 %v3851_v19, 16  ;;  %v1043_v50 = vrot.slane %v1041_v59, 1  ;;  %v1594_v59 = vshll.u32 %v3942_v41, 16 }
  0x95   : > { %1718 = vrot.lane.b32.xlu0 %v1674_v52, %s3343_s11  ;;  %v1137_v52 = vshll.u32 %v3865_v37, 16 }
  0x96   : > { %v3812_v55 = vpop.permute.xlu1 %804  ;;  %v1032_v3 = vor.u32 %v1031_v49, %v1027_v47  ;;  %v1044_v18 = vor.u32 %v1043_v50, %v1039_v63  ;;  %v1218_v47 = vrot.slane %v3895_v56, 1  ;;  %v3980_v63 = vld [vmem:[%s3426_s30 + $0xbc] ss:$0 sps:$4 sm:$0x11]  }
  0x97   : > { %v3820_v9 = vpop.permute.xlu0 %788  ;;  %v1139_v4 = vrot.slane %v1137_v52, 1  ;;  %v3958_v52 = vld [vmem:[%s3426_s30 + $0x50] ss:$0 sps:$4 sm:$0x11]  }
  0x98   : > { %729 = vrot.lane.b32.xlu1 %v668_v2, %s3338_s6  ;;  %v1132_v2 = vrot.slane %v1130_v48, 1  ;;  %v1493_v48 = vshll.u32 %v3936_v1, 16 }
  0x99   : > { %713 = vrot.lane.b32.xlu0 %v572_v8, %s3338_s6  ;;  %v1140_v14 = vor.u32 %v1139_v4, %v1135_v62  ;;  %v1219_v4 = vsel %vm737_vm0, %v1217_v44, %v1218_v47  ;;  %v4023_v47 = vld [vmem:[%s3426_s30 + $0xa8] sm:$0xff]  }
  0x9a   : > { %v3825_v15 = vpop.permute.xlu1 %707  ;;  %v1133_v13 = vsel %vm512_vm1, %v1128_v61, %v1132_v2  ;;  %v3245_v61 = vld [vmem:[%s3426_s30] sm:$0xff]   ;;  %v3975_v2 = vld [vmem:[%s3426_s30 + $0x54] sm:$0xff]  }
  0x9b   : > { %v3828_v17 = vpop.permute.xlu0 %705 }
  0x9c   : > { %1736 = vrot.lane.b32.xlu1 %v1701_v10, %s3343_s11  ;;  %v1046_v10 = vshll.u32 %v3895_v56, 16  ;;  %v1748_v62 = vsel %vm1746_vm3, %v3245_v61, %v3828_v17 }
  0x9d   : > { %1720 = vrot.lane.b32.xlu0 %v1677_v16, %s3343_s11  ;;  %v1144_v16 = vrot.slane %v1142_v7, 1  ;;  %v1491_v7 = vshrl.u32 %v3936_v1, 16 }
  0x9e   : > { %v3835_v22 = vpop.permute.xlu1 %723  ;;  %v1048_v21 = vrot.slane %v1046_v10, 1  ;;  %v1498_v10 = vshll.u32 %v3958_v52, 16 }
  0x9f   : > { %v3840_v26 = vpop.permute.xlu0 %721  ;;  %v1145_v25 = vsel %vm512_vm1, %v1140_v14, %v1144_v16  ;;  %v1596_v16 = vrot.slane %v1594_v59, 1  ;;  %v3247_v59 = vld [vmem:[%s3426_s30 + $0xc] sm:$0xff]  }
  0xa0   : > { %731 = vrot.lane.b32.xlu1 %v680_v5, %s3338_s6  ;;  %v1037_v5 = vsel %vm512_vm1, %v1032_v3, %v1036_v57  ;;  %v1495_v57 = vrot.slane %v1493_v48, 1  ;;  %v3246_v48 = vld [vmem:[%s3426_s30 + $0x6c] sm:$0xff]   ;;  %v1750_v61 = vsel %vm1746_vm3, %v3247_v59, %v3825_v15  ;;  %v1678_v15 = vrot.slane %v3936_v1, 1 }
  0xa1   : > { %715 = vrot.lane.b32.xlu0 %v584_v23, %s3338_s6 }
  0xa2   : > { %v3853_v28 = vpop.permute.xlu1 %916 }
  0xa3   : > { %v3858_v34 = vpop.permute.xlu0 %900 }
  0xa4   : > { %810 = vrot.lane.b32.xlu1 %v776_v11, %s3337_s5  ;;  %v1238_v11 = vrot.slane %v3844_v27, 1 }
  0xa5   : > { %794 = vrot.lane.b32.xlu0 %v752_v30, %s3337_s5  ;;  %v1049_v30 = vsel %vm512_vm1, %v1044_v18, %v1048_v21  ;;  %v1599_v18 = vshrl.u32 %v3965_v54, 16  ;;  %v1505_v21 = vshll.u32 %v3975_v2, 16 }
  0xa6   : > { %v3871_v38 = vpop.permute.xlu1 %1186 }
  0xa7   : > { %v3880_v33 = vpop.permute.xlu0 %1170 }
  0xa8   : > { %812 = vrot.lane.b32.xlu1 %v779_v36, %s3337_s5 }
  0xa9   : > { %796 = vrot.lane.b32.xlu0 %v755_v42, %s3337_s5  ;;  %v1242_v42 = vrot.slane %v3888_v51, 1 }
  0xaa   : > { %v3891_v53 = vpop.permute.xlu1 %1188 }
  0xab   : > { %v3898_v60 = vpop.permute.xlu0 %1172 }
  0xac   : > { %922 = vrot.lane.b32.xlu1 %v3844_v27, %s3336_s4  ;;  %v1589_v27 = vshll.u32 %v3924_v24, 16 }
  0xad   : > { %906 = vrot.lane.b32.xlu0 %v3851_v19, %s3336_s4  ;;  %v1240_v19 = vsel %vm737_vm0, %v1238_v11, %v1239_v20  ;;  %v1606_v20 = vshll.u32 %v3980_v63, 16 }
  0xae   : > { %v3906_v8 = vpop.permute.xlu1 %1266  ;;  %v1591_v56 = vrot.slane %v1589_v27, 1 }
  0xaf   : > { %v3910_v12 = vpop.permute.xlu0 %1250 }
  0xb0   : > { %924 = vrot.lane.b32.xlu1 %v3865_v37, %s3336_s4  ;;  %v3244_v37 = vld [vmem:[%s3426_s30 + $0x60] sm:$0xff]  }
  0xb1   : > { %908 = vrot.lane.b32.xlu0 %v3875_v43, %s3336_s4  ;;  %v1764_v51 = vsel %vm1746_vm3, %v3244_v37, %v3840_v26  ;;  %v1587_v43 = vshrl.u32 %v3924_v24, 16  ;;  %v1243_v26 = vsel %vm737_vm0, %v1241_v40, %v1242_v42  ;;  %v1766_v37 = vsel %vm1746_vm3, %v3246_v48, %v3835_v22 }
  0xb2   : > { %v3917_v6 = vpop.permute.xlu1 %1268  ;;  %v1797_v17 = vsel %vm1779_vm4, %v1764_v51, %v3795_v46  ;;  %v3992_v46 = vld [vmem:[%s3426_s30 + $0x5c] ss:$0 sps:$4 sm:$0x11]  }
  0xb3   : > { %v3920_v23 = vpop.permute.xlu0 %1252  ;;  %v1592_v14 = vor.u32 %v1591_v56, %v1587_v43  ;;  %v4032_v56 = vld [vmem:[%s3426_s30 + $0x48] sm:$0xff]  }
  0xb4   : > { %1194 = vrot.lane.b32.xlu1 %v1133_v13, %s3339_s7  ;;  %v1781_v13 = vsel %vm1779_vm4, %v1748_v62, %v3804_v58  ;;  %v1496_v58 = vor.u32 %v1495_v57, %v1491_v7  ;;  %v1703_v7 = vrot.slane %v3942_v41, 1  ;;  %v4047_v57 = vld [vmem:[%s3426_s30 + $0xb0] ss:$0 sps:$4 sm:$0x11]  }
  0xb5   : > { %1178 = vrot.lane.b32.xlu0 %v1037_v5, %s3339_s7  ;;  %v1601_v5 = vshll.u32 %v3965_v54, 16  ;;  %v1814_v32 = vsel %vm1812_vm5, %v1781_v13, %v3784_v39  ;;  %v684_v13 = vshll.u32 %v4023_v47, 16 }
  0xb6   : > { %v3930_v0 = vpop.permute.xlu1 %1378  ;;  %v1847_v40 = vsel %vm1845_vm6, %v1814_v32, %v3880_v33  ;;  %v1507_v33 = vrot.slane %v1505_v21, 1  ;;  %v4088_v32 = vld [vmem:[%s3426_s30 + $0xb4] sm:$0xff]  }
  0xb7   : > { %v3938_v36 = vpop.permute.xlu0 %1362  ;;  %v1880_v39 = vsel %vm1878_vm7, %v1847_v40, %v3910_v12 }
  0xb8   : > { %1196 = vrot.lane.b32.xlu1 %v1145_v25, %s3339_s7  ;;  %v1830_v25 = vsel %vm1812_vm5, %v1797_v17, %v3768_v29  ;;  %v1702_v29 = vrot.slane %v3924_v24, 1  ;;  %v1913_v51 = vsel %vm1911_vm8, %v1880_v39, %v3938_v36  ;;  %v1799_v17 = vsel %vm1779_vm4, %v1766_v37, %v3812_v55  ;;  %v4063_v55 = vld [vmem:[%s3426_s30 + $0x50] ss:$0 sps:$4 sm:$0x11]  }
  0xb9   : > { %1180 = vrot.lane.b32.xlu0 %v1049_v30, %s3339_s7  ;;  %v1503_v30 = vshrl.u32 %v3975_v2, 16  ;;  %v1863_v31 = vsel %vm1845_vm6, %v1830_v25, %v3871_v38  ;;  %v1597_v38 = vsel %vm512_vm1, %v1592_v14, %v1596_v16  ;;  %v1832_v14 = vsel %vm1812_vm5, %v1799_v17, %v3853_v28 }
  0xba   : > { %v3949_v45 = vpop.permute.xlu1 %1380  ;;  %v1896_v42 = vsel %vm1878_vm7, %v1863_v31, %v3906_v8  ;;  %v1510_v8 = vshll.u32 %v3992_v46, 16  ;;  %v1679_v16 = vrot.slane %v3958_v52, 1  ;;  %v1865_v21 = vsel %vm1845_vm6, %v1832_v14, %v3891_v53 }
  0xbb   : > { %v3955_v49 = vpop.permute.xlu0 %1364  ;;  %v1929_v44 = vsel %vm1911_vm8, %v1896_v42, %v3930_v0  ;;  %v1608_v0 = vrot.slane %v1606_v20, 1  ;;  %v682_v28 = vshrl.u32 %v4023_v47, 16  ;;  %v689_v20 = vshll.u32 %v4047_v57, 16 }
  0xbc   : > { %1274 = vrot.lane.b32.xlu1 %v1240_v19, %s3340_s8  ;;  %v1500_v19 = vrot.slane %v1498_v10, 1  ;;  %v1512_v10 = vrot.slane %v1510_v8, 1  ;;  %v686_v31 = vrot.slane %v684_v13, 1  ;;  %v696_v8 = vshll.u32 %v4088_v32, 16 }
  0xbd   : > { %1258 = vrot.lane.b32.xlu0 %v1216_v35, %s3340_s8  ;;  %v1603_v35 = vrot.slane %v1601_v5, 1  ;;  %v588_v5 = vshll.u32 %v4032_v56, 16  ;;  %v1680_v37 = vsel %vm737_vm0, %v1678_v15, %v1679_v16 }
  0xbe   : > { %v1651_v3 = vpop.permute.xlu1 %1650  ;;  %v1501_v22 = vsel %vm512_vm1, %v1496_v58, %v1500_v19  ;;  %v1898_v58 = vsel %vm1878_vm7, %v1865_v21, %v3917_v6  ;;  %v781_v21 = vrot.slane %v4047_v57, 1 }
  0xbf   : > { %v1635_v50 = vpop.permute.xlu0 %1634  ;;  %v1962_v12 = vsel %vm1944_vm9, %v1929_v44, %v1651_v3  ;;  %v1604_v3 = vor.u32 %v1603_v35, %v1599_v18  ;;  %v590_v42 = vrot.slane %v588_v5, 1 }
  0xc0   : > { %1276 = vrot.lane.b32.xlu1 %v1243_v26, %s3340_s8  ;;  %v1946_v62 = vsel %vm1944_vm9, %v1913_v51, %v1635_v50  ;;  %v1508_v50 = vor.u32 %v1507_v33, %v1503_v30  ;;  %v1931_v30 = vsel %vm1911_vm8, %v1898_v58, %v3949_v45  ;;  %v3225_v33 = vld [vmem:[%s3426_s30 + $0xbc] ss:$0 sps:$4 sm:$0x11]   ;;  %v757_v58 = vrot.slane %v4063_v55, 1 }
  0xc1   : > { %1260 = vrot.lane.b32.xlu0 %v1219_v4, %s3340_s8 }
  0xc2   : > { %v3997_v11 = vpop.permute.xlu1 %1652 }
  0xc3   : > { %v4005_v27 = vpop.permute.xlu0 %1636  ;;  %v1964_v19 = vsel %vm1944_vm9, %v1931_v30, %v3997_v11  ;;  %v687_v11 = vor.u32 %v686_v31, %v682_v28  ;;  %v784_v30 = vrot.slane %v3225_v33, 1 }
  0xc4   : > { %1386 = vrot.lane.b32.xlu1 %v3924_v24, %s3341_s9  ;;  %v1705_v24 = vrot.slane %v3965_v54, 1 }
  0xc5   : > { %1370 = vrot.lane.b32.xlu0 %v3936_v1, %s3341_s9  ;;  %v1783_v1 = vsel %vm1779_vm4, %v1750_v61, %v3820_v9  ;;  %v586_v9 = vshrl.u32 %v4032_v56, 16  ;;  %v1681_v61 = vrot.slane %v3975_v2, 1 }
  0xc6   : > { %v1731_v43 = vpop.permute.xlu1 %1730  ;;  %v1816_v18 = vsel %vm1812_vm5, %v1783_v1, %v3858_v34  ;;  %v1609_v34 = vsel %vm512_vm1, %v1604_v3, %v1608_v0 }
  0xc7   : > { %v1715_v26 = vpop.permute.xlu0 %1714  ;;  %v1995_v4 = vsel %vm1977_vm10, %v1962_v12, %v1731_v43  ;;  %v1849_v52 = vsel %vm1845_vm6, %v1816_v18, %v3898_v60  ;;  %v1513_v60 = vsel %vm512_vm1, %v1508_v50, %v1512_v10  ;;  %v591_v51 = vor.u32 %v590_v42, %v586_v9  ;;  %v3227_v43 = vld [vmem:[%s3426_s30 + $0x5c] ss:$0 sps:$4 sm:$0x11]  }
  0xc8   : > { %1388 = vrot.lane.b32.xlu1 %v3965_v54, %s3341_s9  ;;  %v1979_v36 = vsel %vm1977_vm10, %v1946_v62, %v1715_v26  ;;  %3056 = vmatprep.mubr.msk.bf16.mxu1 %vm2030_vm11, %v1995_v4  ;;  %v1882_v53 = vsel %vm1878_vm7, %v1849_v52, %v3920_v23  ;;  %v593_v23 = vshll.u32 %v4063_v55, 16  ;;  %v1682_v62 = vrot.slane %v3992_v46, 1 }
  0xc9   : > { %1372 = vrot.lane.b32.xlu0 %v3975_v2, %s3341_s9  ;;  %3040 = vmatprep.mubr.msk.bf16.mxu0 %vm2030_vm11, %v1979_v36  ;;  %v1915_v6 = vsel %vm1911_vm8, %v1882_v53, %v3955_v49  ;;  %v1704_v49 = vsel %vm737_vm0, %v1702_v29, %v1703_v7  ;;  %v1706_v29 = vrot.slane %v3980_v63, 1  ;;  %v694_v4 = vshrl.u32 %v4088_v32, 16 }
  0xca   : > { %v4059_v41 = vpop.permute.xlu1 %725  ;;  %v1948_v45 = vsel %vm1944_vm9, %v1915_v6, %v4005_v27  ;;  %v691_v27 = vrot.slane %v689_v20, 1  ;;  %v595_v12 = vrot.slane %v593_v23, 1  ;;  %v701_v36 = vshll.u32 %v3225_v33, 16  ;;  %v4154_v20 = vld [vmem:[%s3426_s30 + $0xb4] sm:$0xff]  }
  0xcb   : > { %v4070_v25 = vpop.permute.xlu0 %709  ;;  %v605_v63 = vshll.u32 %v3227_v43, 16  ;;  %v1707_v2 = vsel %vm737_vm0, %v1705_v24, %v1706_v29  ;;  %v1683_v13 = vsel %vm737_vm0, %v1681_v61, %v1682_v62  ;;  %v780_v18 = vrot.slane %v4023_v47, 1  ;;  %v3235_v62 = vld [vmem:[%s3426_s30 + $0x68] ss:$0 sps:$4 sm:$0x11]  }
  0xcc   : > { %1658 = vrot.lane.b32.xlu1 %v1597_v38, %s3342_s10  ;;  %v4096_v38 = vld [vmem:[%s3426_s30 + $0x54] sm:$0xff]   ;;  %v692_v26 = vsel %vm512_vm1, %v687_v11, %v691_v27  ;;  %v596_v7 = vsel %vm512_vm1, %v591_v51, %v595_v12  ;;  %v703_v50 = vrot.slane %v701_v36, 1  ;;  %v756_v52 = vrot.slane %v4032_v56, 1  ;;  %v3233_v11 = vld [vmem:[%s3426_s30 + $0x5c] ss:$0 sps:$4 sm:$0x11]  }
  0xcd   : > { %1642 = vrot.lane.b32.xlu0 %v1501_v22, %s3342_s10  ;;  %v600_v0 = vshll.u32 %v4096_v38, 16  ;;  %v698_v22 = vrot.slane %v696_v8, 1  ;;  %v598_v54 = vshrl.u32 %v4096_v38, 16  ;;  %v607_v1 = vrot.slane %v605_v63, 1 }
  0xce   : > { %v1733_v40 = vpop.permute.xlu1 %1732  ;;  %v782_v57 = vsel %vm737_vm0, %v780_v18, %v781_v21  ;;  %v783_v53 = vrot.slane %v4088_v32, 1  ;;  %v758_v55 = vsel %vm737_vm0, %v756_v52, %v757_v58  ;;  %v759_v31 = vrot.slane %v4096_v38, 1 }
  0xcf   : > { %v1997_v35 = vsel %vm1977_vm10, %v1964_v19, %v1733_v40  ;;  %v1717_v39 = vpop.permute.xlu0 %1716  ;;  %v602_v15 = vrot.slane %v600_v0, 1  ;;  %v699_v46 = vor.u32 %v698_v22, %v694_v4  ;;  %v760_v6 = vrot.slane %v3227_v43, 1  ;;  %v4164_v19 = vld [vmem:[%s3426_s30 + $0x54] sm:$0xff]   ;;  %v3234_v43 = vld [vmem:[%s3426_s30 + $0xc8] ss:$0 sps:$4 sm:$0x11]  }
  0xd0   : > { %v1981_v44 = vsel %vm1977_vm10, %v1948_v45, %v1717_v39  ;;  %1660 = vrot.lane.b32.xlu1 %v1609_v34, %s3342_s10  ;;  %3057 = vmatmul.mubr.msk.bf16.vlgmr.msra.gmra.mrb[0].mxu1 %vm2030_vm11, %v1997_v35  ;;  %v1149_v42 = vshll.u32 %v4154_v20, 16  ;;  %v785_v23 = vsel %vm737_vm0, %v783_v53, %v784_v30  ;;  %v4173_v45 = vld [vmem:[%s3426_s30 + $0xc0] sm:$0xff]   ;;  %v3232_v35 = vld [vmem:[%s3426_s30 + $0xbc] ss:$0 sps:$4 sm:$0x11]   ;;  %v1053_v27 = vshll.u32 %v4164_v19, 16 }
  0xd1   : > { %1644 = vrot.lane.b32.xlu0 %v1513_v60, %s3342_s10  ;;  %3041 = vmatmul.mubr.msk.bf16.vlgmr.msra.gmra.mrb[0].mxu0 %vm2030_vm11, %v1981_v44  ;;  %v603_v14 = vor.u32 %v602_v15, %v598_v54  ;;  %v704_v5 = vsel %vm512_vm1, %v699_v46, %v703_v50  ;;  %v761_v44 = vsel %vm737_vm0, %v759_v31, %v760_v6  ;;  %v1147_v8 = vshrl.u32 %v4154_v20, 16 }
  0xd2   : > { %v4111_v48 = vpop.permute.xlu1 %727  ;;  %v1154_v51 = vshll.u32 %v3232_v35, 16  ;;  %v1051_v12 = vshrl.u32 %v4164_v19, 16  ;;  %v1161_v0 = vshll.u32 %v4173_v45, 16  ;;  %v1055_v29 = vrot.slane %v1053_v27, 1 }
  0xd3   : > { %v4116_v59 = vpop.permute.xlu0 %711  ;;  %v608_v9 = vsel %vm512_vm1, %v603_v14, %v607_v1  ;;  %v1058_v61 = vshll.u32 %v3233_v11, 16  ;;  %v1159_v36 = vshrl.u32 %v4173_v45, 16  ;;  %v1166_v15 = vshll.u32 %v3234_v43, 16 }
  0xd4   : > { %1738 = vrot.lane.b32.xlu1 %v1704_v49, %s3343_s11  ;;  %v4180_v49 = vld [vmem:[%s3426_s30 + $0x60] sm:$0xff]   ;;  %v1163_v54 = vrot.slane %v1161_v0, 1  ;;  %v1056_v46 = vor.u32 %v1055_v29, %v1051_v12  ;;  %v1070_v14 = vshll.u32 %v3235_v62, 16  ;;  %v1245_v31 = vrot.slane %v3232_v35, 1 }
  0xd5   : > { %1722 = vrot.lane.b32.xlu0 %v1680_v37, %s3343_s11  ;;  %v1151_v37 = vrot.slane %v1149_v42, 1  ;;  %v1063_v63 = vshrl.u32 %v4180_v49, 16  ;;  %v1060_v50 = vrot.slane %v1058_v61, 1  ;;  %v1168_v21 = vrot.slane %v1166_v15, 1 }
  0xd6   : > { %v4126_v3 = vpop.permute.xlu1 %806  ;;  %v1164_v18 = vor.u32 %v1163_v54, %v1159_v36  ;;  %v1247_v35 = vrot.slane %v4173_v45, 1  ;;  %v1223_v12 = vrot.slane %v4180_v49, 1  ;;  %v1224_v0 = vrot.slane %v3235_v62, 1  ;;  %v4243_v29 = vld [vmem:[%s3426_s30 + $0xc8] ss:$0 sps:$4 sm:$0x11]  }
  0xd7   : > { %v4130_v17 = vpop.permute.xlu0 %790  ;;  %v1152_v22 = vor.u32 %v1151_v37, %v1147_v8  ;;  %v1061_v52 = vsel %vm512_vm1, %v1056_v46, %v1060_v50  ;;  %v4229_v8 = vld [vmem:[%s3426_s30 + $0xc0] sm:$0xff]   ;;  %v1248_v37 = vrot.slane %v3234_v43, 1  ;;  %v1618_v54 = vshll.u32 %v4243_v29, 16  ;;  %v3248_v50 = vld [vmem:[%s3426_s30 + $0x78] sm:$0xff]  }
  0xd8   : > { %733 = vrot.lane.b32.xlu1 %v692_v26, %s3338_s6  ;;  %v1065_v26 = vshll.u32 %v4180_v49, 16  ;;  %v1169_v30 = vsel %vm512_vm1, %v1164_v18, %v1168_v21  ;;  %v1225_v36 = vsel %vm737_vm0, %v1223_v12, %v1224_v0 }
  0xd9   : > { %717 = vrot.lane.b32.xlu0 %v596_v7, %s3338_s6  ;;  %v1156_v7 = vrot.slane %v1154_v51, 1  ;;  %v4236_v51 = vld [vmem:[%s3426_s30 + $0x60] sm:$0xff]   ;;  %v1249_v43 = vsel %vm737_vm0, %v1247_v35, %v1248_v37 }
  0xda   : > { %v4135_v10 = vpop.permute.xlu1 %808 }
  0xdb   : > { %v4138_v16 = vpop.permute.xlu0 %792 }
  0xdc   : > { %1740 = vrot.lane.b32.xlu1 %v1707_v2, %s3343_s11 }
  0xdd   : > { %1724 = vrot.lane.b32.xlu0 %v1683_v13, %s3343_s11  ;;  %v1067_v13 = vrot.slane %v1065_v26, 1  ;;  %v1613_v26 = vshll.u32 %v4229_v8, 16 }
  0xde   : > { %v4145_v28 = vpop.permute.xlu1 %918 }
  0xdf   : > { %v4150_v34 = vpop.permute.xlu0 %902  ;;  %v1068_v58 = vor.u32 %v1067_v13, %v1063_v63  ;;  %v1611_v63 = vshrl.u32 %v4229_v8, 16  ;;  %v1615_v46 = vrot.slane %v1613_v26, 1  ;;  %v1768_v13 = vsel %vm1746_vm3, %v3248_v50, %v4059_v41  ;;  %v3250_v50 = vld [vmem:[%s3426_s30 + $0x84] sm:$0xff]  }
  0xe0   : > { %735 = vrot.lane.b32.xlu1 %v704_v5, %s3338_s6  ;;  %v1157_v5 = vsel %vm512_vm1, %v1152_v22, %v1156_v7  ;;  %v4255_v22 = vld [vmem:[%s3426_s30 + $0x68] ss:$0 sps:$4 sm:$0x11]   ;;  %v4260_v7 = vld [vmem:[%s3426_s30 + $0x6c] sm:$0xff]  }
  0xe1   : > { %719 = vrot.lane.b32.xlu0 %v608_v9, %s3338_s6  ;;  %v1616_v37 = vor.u32 %v1615_v46, %v1611_v63 }
  0xe2   : > { %v4159_v60 = vpop.permute.xlu1 %920 }
  0xe3   : > { %v4166_v40 = vpop.permute.xlu0 %904 }
  0xe4   : > { %814 = vrot.lane.b32.xlu1 %v782_v57, %s3337_s5  ;;  %v1072_v57 = vrot.slane %v1070_v14, 1  ;;  %v1515_v14 = vshrl.u32 %v4236_v51, 16 }
  0xe5   : > { %798 = vrot.lane.b32.xlu0 %v758_v55, %s3337_s5  ;;  %v1244_v55 = vrot.slane %v4154_v20, 1 }
  0xe6   : > { %v4176_v39 = vpop.permute.xlu1 %1190  ;;  %v1073_v42 = vsel %vm512_vm1, %v1068_v58, %v1072_v57  ;;  %v1801_v57 = vsel %vm1779_vm4, %v1768_v13, %v4126_v3  ;;  %v1770_v13 = vsel %vm1746_vm3, %v3250_v50, %v4111_v48 }
  0xe7   : > { %v4184_v33 = vpop.permute.xlu0 %1174 }
  0xe8   : > { %816 = vrot.lane.b32.xlu1 %v785_v23, %s3337_s5  ;;  %v1220_v23 = vrot.slane %v4164_v19, 1 }
  0xe9   : > { %800 = vrot.lane.b32.xlu0 %v761_v44, %s3337_s5  ;;  %v1221_v44 = vrot.slane %v3233_v11, 1  ;;  %s210_s5 = sand.u32 1, %s3318_s13  }
  0xea   : > { %v4192_v24 = vpop.permute.xlu1 %1192 }
  0xeb   : > { %v4196_v4 = vpop.permute.xlu0 %1176  ;;  %v1222_v11 = vsel %vm737_vm0, %v1220_v23, %v1221_v44  ;;  %v1620_v23 = vrot.slane %v1618_v54, 1  ;;  %v4286_v44 = vld [vmem:[%s3426_s30 + $0x74] ss:$0 sps:$4 sm:$0x11]  }
  0xec   : > { %926 = vrot.lane.b32.xlu1 %v4154_v20, %s3336_s4  ;;  %v1246_v20 = vsel %vm737_vm0, %v1244_v55, %v1245_v31  ;;  %v1834_v31 = vsel %vm1812_vm5, %v1801_v57, %v4145_v28  ;;  %v1534_v54 = vshll.u32 %v4286_v44, 16 }
  0xed   : > { %910 = vrot.lane.b32.xlu0 %v4164_v19, %s3336_s4  ;;  %v1621_v46 = vsel %vm512_vm1, %v1616_v37, %v1620_v23  ;;  %v1708_v23 = vrot.slane %v4229_v8, 1  ;;  %v1685_v37 = vrot.slane %v4255_v22, 1 }
  0xee   : > { %v4204_v2 = vpop.permute.xlu1 %1270 }
  0xef   : > { %v4206_v1 = vpop.permute.xlu0 %1254 }
  0xf0   : > { %928 = vrot.lane.b32.xlu1 %v4173_v45, %s3336_s4  ;;  %v4250_v45 = vld [vmem:[%s3426_s30 + $0xcc] sm:$0xff]  }
  0xf1   : > { %912 = vrot.lane.b32.xlu0 %v4180_v49, %s3336_s4  ;;  %v1517_v49 = vshll.u32 %v4236_v51, 16  ;;  %v1623_v18 = vshrl.u32 %v4250_v45, 16  ;;  %v1625_v21 = vshll.u32 %v4250_v45, 16 }
  0xf2   : > { %v4213_v9 = vpop.permute.xlu1 %1272 }
  0xf3   : > { %v4216_v53 = vpop.permute.xlu0 %1256  ;;  %v1519_v41 = vrot.slane %v1517_v49, 1  ;;  %v1627_v12 = vrot.slane %v1625_v21, 1  ;;  %v3251_v21 = vld [vmem:[%s3426_s30 + $0x24] sm:$0xff]  }
  0xf4   : > { %1198 = vrot.lane.b32.xlu1 %v1157_v5, %s3339_s7  ;;  %v4270_v5 = vld [vmem:[%s3426_s30 + $0xd4] ss:$0 sps:$4 sm:$0x11]  }
  0xf5   : > { %1182 = vrot.lane.b32.xlu0 %v1061_v52, %s3339_s7  ;;  %v3249_v52 = vld [vmem:[%s3426_s30 + $0x18] sm:$0xff]  }
  0xf6   : > { %v4222_v6 = vpop.permute.xlu1 %1382  ;;  %v1752_v58 = vsel %vm1746_vm3, %v3249_v52, %v4070_v25  ;;  %v1529_v25 = vshll.u32 %v4260_v7, 16  ;;  %v1803_v52 = vsel %vm1779_vm4, %v1770_v13, %v4135_v10 }
  0xf7   : > { %v4226_v27 = vpop.permute.xlu0 %1366  ;;  %v1785_v55 = vsel %vm1779_vm4, %v1752_v58, %v4130_v17 }
  0xf8   : > { %1200 = vrot.lane.b32.xlu1 %v1169_v30, %s3339_s7  ;;  %v1522_v30 = vshll.u32 %v4255_v22, 16  ;;  %v1818_v3 = vsel %vm1812_vm5, %v1785_v55, %v4150_v34  ;;  %v1630_v34 = vshll.u32 %v4270_v5, 16 }
  0xf9   : > { %1184 = vrot.lane.b32.xlu0 %v1073_v42, %s3339_s7  ;;  %v1851_v17 = vsel %vm1845_vm6, %v1818_v3, %v4184_v33  ;;  %v1520_v33 = vor.u32 %v1519_v41, %v1515_v14  ;;  %s2635_s7 = sshll.u32 %s210_s5, 7 }
  0xfa   : > { %v4238_v19 = vpop.permute.xlu1 %1384  ;;  %v1524_v26 = vrot.slane %v1522_v30, 1  ;;  %v1632_v14 = vrot.slane %v1630_v34, 1 }
  0xfb   : > { %v4245_v61 = vpop.permute.xlu0 %1368 }
  0xfc   : > { %1278 = vrot.lane.b32.xlu1 %v1246_v20, %s3340_s8  ;;  %v1867_v20 = vsel %vm1845_vm6, %v1834_v31, %v4176_v39  ;;  %v1884_v39 = vsel %vm1878_vm7, %v1851_v17, %v4206_v1  ;;  %v1525_v48 = vsel %vm512_vm1, %v1520_v33, %v1524_v26 }
  0xfd   : > { %1262 = vrot.lane.b32.xlu0 %v1222_v11, %s3340_s8  ;;  %v1527_v11 = vshrl.u32 %v4260_v7, 16  ;;  %v1900_v28 = vsel %vm1878_vm7, %v1867_v20, %v4204_v2  ;;  %v1917_v2 = vsel %vm1911_vm8, %v1884_v39, %v4226_v27 }
  0xfe   : > { %v1655_v62 = vpop.permute.xlu1 %1654  ;;  %v1933_v0 = vsel %vm1911_vm8, %v1900_v28, %v4222_v6  ;;  %v1688_v28 = vrot.slane %v4286_v44, 1 }
  0xff   : > { %v1639_v15 = vpop.permute.xlu0 %1638 }
 0x100   : > { %1280 = vrot.lane.b32.xlu1 %v1249_v43, %s3340_s8  ;;  %v1966_v43 = vsel %vm1944_vm9, %v1933_v0, %v1655_v62  ;;  %v1950_v1 = vsel %vm1944_vm9, %v1917_v2, %v1639_v15  ;;  %v1628_v62 = vor.u32 %v1627_v12, %v1623_v18  ;;  %v1754_v15 = vsel %vm1746_vm3, %v3251_v21, %v4116_v59 }
 0x101   : > { %1264 = vrot.lane.b32.xlu0 %v1225_v36, %s3340_s8  ;;  %v1531_v36 = vrot.slane %v1529_v25, 1  ;;  %v1787_v58 = vsel %vm1779_vm4, %v1754_v15, %v4138_v16  ;;  %v1836_v18 = vsel %vm1812_vm5, %v1803_v52, %v4159_v60  ;;  %v1536_v59 = vrot.slane %v1534_v54, 1  ;;  %v3252_v15 = vld [vmem:[%s3426_s30 + $0x90] sm:$0xff]   ;;  %s4491_s8 = scalar_lea.vmem [#allocation2], %s2635_s7 }
 0x102   : > { %v1657_v42 = vpop.permute.xlu1 %1656  ;;  %v1820_v10 = vsel %vm1812_vm5, %v1787_v58, %v4166_v40  ;;  %v1869_v30 = vsel %vm1845_vm6, %v1836_v18, %v4192_v24  ;;  %v1633_v60 = vsel %vm512_vm1, %v1628_v62, %v1632_v14  ;;  %v1709_v25 = vrot.slane %v4243_v29, 1 }
 0x103   : > { %v1641_v35 = vpop.permute.xlu0 %1640  ;;  %v1532_v41 = vor.u32 %v1531_v36, %v1527_v11  ;;  %v1853_v31 = vsel %vm1845_vm6, %v1820_v10, %v4196_v4  ;;  %v1902_v16 = vsel %vm1878_vm7, %v1869_v30, %v4213_v9  ;;  %v1684_v4 = vrot.slane %v4236_v51, 1 }
 0x104   : > { %1390 = vrot.lane.b32.xlu1 %v4229_v8, %s3341_s9  ;;  %v1886_v40 = vsel %vm1878_vm7, %v1853_v31, %v4216_v53  ;;  %v1935_v24 = vsel %vm1911_vm8, %v1902_v16, %v4238_v19  ;;  %v1711_v29 = vrot.slane %v4250_v45, 1 }
 0x105   : > { %1374 = vrot.lane.b32.xlu0 %v4236_v51, %s3341_s9  ;;  %v1919_v9 = vsel %vm1911_vm8, %v1886_v40, %v4245_v61  ;;  %v1968_v3 = vsel %vm1944_vm9, %v1935_v24, %v1657_v42  ;;  %v1537_v8 = vsel %vm512_vm1, %v1532_v41, %v1536_v59  ;;  %v1710_v51 = vsel %vm737_vm0, %v1708_v23, %v1709_v25 }
 0x106   : > { %v1735_v49 = vpop.permute.xlu1 %1734  ;;  %v1952_v53 = vsel %vm1944_vm9, %v1919_v9, %v1641_v35  ;;  %v1712_v61 = vrot.slane %v4270_v5, 1  ;;  %v1686_v42 = vsel %vm737_vm0, %v1684_v4, %v1685_v37  ;;  %v1687_v35 = vrot.slane %v4260_v7, 1 }
 0x107   : > { %v1999_v63 = vsel %vm1977_vm10, %v1966_v43, %v1735_v49  ;;  %v1719_v6 = vpop.permute.xlu0 %1718 }
 0x108   : > { %v1983_v27 = vsel %vm1977_vm10, %v1950_v1, %v1719_v6  ;;  %1392 = vrot.lane.b32.xlu1 %v4250_v45, %s3341_s9  ;;  %3060 = vmatprep.mubr.msk.bf16.mxu1 %vm2030_vm11, %v1999_v63  ;;  %v1713_v34 = vsel %vm737_vm0, %v1711_v29, %v1712_v61  ;;  %v1689_v0 = vsel %vm737_vm0, %v1687_v35, %v1688_v28 }
 0x109   : > { %1376 = vrot.lane.b32.xlu0 %v4260_v7, %s3341_s9  ;;  %3044 = vmatprep.mubr.msk.bf16.mxu0 %vm2030_vm11, %v1983_v27  ;;  %s2919_s9 = sshll.u32 %s3326_s15, 11  ;;  %s4568_s15 = scalar_lea.sflag [#allocation3], %s210_s5 }
 0x10a   : > { %v4334_v57 = vpop.permute.xlu1 %729  ;;  %s4558_s19 = scalar_lea.hbm %s4618_s3, %s2919_s9 }
 0x10b   : > { %v4340_v55 = vpop.permute.xlu0 %713  ;;  %v1772_v52 = vsel %vm1746_vm3, %v3252_v15, %v4334_v57 }
 0x10c   : > { %1662 = vrot.lane.b32.xlu1 %v1621_v46, %s3342_s10 }
 0x10d   : > { %1646 = vrot.lane.b32.xlu0 %v1525_v48, %s3342_s10  ;;  %v3253_v48 = vld [vmem:[%s3426_s30 + $0x30] sm:$0xff]  }
 0x10e   : > { %v1737_v20 = vpop.permute.xlu1 %1736  ;;  %v1756_v58 = vsel %vm1746_vm3, %v3253_v48, %v4340_v55 }
 0x10f   : > { %v2001_v19 = vsel %vm1977_vm10, %v1968_v3, %v1737_v20  ;;  %v1721_v11 = vpop.permute.xlu0 %1720  ;;  %v3254_v20 = vld [vmem:[%s3426_s30 + $0x9c] sm:$0xff]  }
 0x110   : > { %v1985_v17 = vsel %vm1977_vm10, %v1952_v53, %v1721_v11  ;;  %1664 = vrot.lane.b32.xlu1 %v1633_v60, %s3342_s10  ;;  %3061 = vmatmul.mubr.msk.bf16.gmra.mrb[4].mxu1 %vm2030_vm11, %v2001_v19  ;;  %v3255_v53 = vld [vmem:[%s3426_s30 + $0x3c] sm:$0xff]  }
 0x111   : > { %1648 = vrot.lane.b32.xlu0 %v1537_v8, %s3342_s10  ;;  %3045 = vmatmul.mubr.msk.bf16.gmra.mrb[4].mxu0 %vm2030_vm11, %v1985_v17  ;;  %s2511_s10 = sshll.u32 %s4491_s8, 4  ;;  %s4561_s10 = int_to_ptr.vmem [resolvable:$true] %s2511_s10 }
 0x112   : > { %v732_v22 = vpop.permute.xlu1 %731  ;;  %s3256_s21 = scalar_lea.vmem %s4561_s10, 2048  ;;  %p3263_p1 = scmp.lt.s32.totalorder %s4561_s10, %s3261_s26 }
 0x113   : > { %v716_v12 = vpop.permute.xlu0 %715  ;;  %v1774_v8 = vsel %vm1746_vm3, %v3254_v20, %v732_v22  ;;  %p3257_p12 = scmp.ne.s32.totalorder %s4561_s10, %s3256_s21  ;;  %p3264_p2 = scmp.lt.s32.totalorder %s3262_s27, %s3256_s21 }
 0x114   : > { %1742 = vrot.lane.b32.xlu1 %v1710_v51, %s3343_s11  ;;  %v1758_v19 = vsel %vm1746_vm3, %v3255_v53, %v716_v12 }
 0x115   : > { %1726 = vrot.lane.b32.xlu0 %v1686_v42, %s3343_s11  ;;  %p3258_p13 = pnand %p3257_p12, %p3406_p4  ;;  %p3265_p3 = por %p3264_p2, %p3263_p1 }
 0x116   : > { %v811_v39 = vpop.permute.xlu1 %810 }
 0x117   : > { %v795_v45 = vpop.permute.xlu0 %794  ;;  %v1805_v18 = vsel %vm1779_vm4, %v1772_v52, %v811_v39  ;;  %p3259_p0 = pneg %p3258_p13 }
 0x118   : > { %1744 = vrot.lane.b32.xlu1 %v1713_v34, %s3343_s11  ;;  %v1789_v41 = vsel %vm1779_vm4, %v1756_v58, %v795_v45 }
 0x119   : > { %1728 = vrot.lane.b32.xlu0 %v1689_v0, %s3343_s11  ;;  %p3266_p5 = pnand %p3265_p3, %p3259_p0 }
 0x11a   : > { %v813_v5 = vpop.permute.xlu1 %812 }
 0x11b   : > { %v797_v33 = vpop.permute.xlu0 %796  ;;  %v1807_v11 = vsel %vm1779_vm4, %v1774_v8, %v813_v5 }
 0x11c   : > { %v1791_v17 = vsel %vm1779_vm4, %v1758_v19, %v797_v33 }
 0x11e   : > { %v923_v7 = vpop.permute.xlu1 %922 }
 0x11f   : > { %v907_v26 = vpop.permute.xlu0 %906  ;;  %v1838_v59 = vsel %vm1812_vm5, %v1805_v18, %v923_v7 }
 0x120   : > { %v1822_v30 = vsel %vm1812_vm5, %v1789_v41, %v907_v26 }
 0x122   : > { %v925_v44 = vpop.permute.xlu1 %924 }
 0x123   : > { %v909_v2 = vpop.permute.xlu0 %908  ;;  %v1840_v51 = vsel %vm1812_vm5, %v1807_v11, %v925_v44 }
 0x124   : > { %v1824_v61 = vsel %vm1812_vm5, %v1791_v17, %v909_v2 }
 0x126   : > { %v1195_v43 = vpop.permute.xlu1 %1194 }
 0x127   : > { %v1179_v49 = vpop.permute.xlu0 %1178  ;;  %v1871_v31 = vsel %vm1845_vm6, %v1838_v59, %v1195_v43 }
 0x128   : > { %v1855_v57 = vsel %vm1845_vm6, %v1822_v30, %v1179_v49 }
 0x12a   : > { %v1197_v36 = vpop.permute.xlu1 %1196 }
 0x12b   : > { %v1181_v54 = vpop.permute.xlu0 %1180  ;;  %v1873_v22 = vsel %vm1845_vm6, %v1840_v51, %v1197_v36 }
 0x12c   : > { %v1857_v35 = vsel %vm1845_vm6, %v1824_v61, %v1181_v54 }
 0x12e   : > { %v1275_v1 = vpop.permute.xlu1 %1274 }
 0x12f   : > { %v1259_v63 = vpop.permute.xlu0 %1258  ;;  %v1904_v60 = vsel %vm1878_vm7, %v1871_v31, %v1275_v1 }
 0x130   : > { %v1888_v55 = vsel %vm1878_vm7, %v1855_v57, %v1259_v63 }
 0x132   : > { %v1277_v6 = vpop.permute.xlu1 %1276 }
 0x133   : > { %v1261_v46 = vpop.permute.xlu0 %1260  ;;  %v1906_v28 = vsel %vm1878_vm7, %v1873_v22, %v1277_v6 }
 0x134   : > { %v1890_v12 = vsel %vm1878_vm7, %v1857_v35, %v1261_v46 }
 0x136   : > { %v1387_v50 = vpop.permute.xlu1 %1386 }
 0x137   : > { %v1371_v13 = vpop.permute.xlu0 %1370  ;;  %v1937_v23 = vsel %vm1911_vm8, %v1904_v60, %v1387_v50 }
 0x138   : > { %v1921_v40 = vsel %vm1911_vm8, %v1888_v55, %v1371_v13 }
 0x13a   : > { %v1389_v27 = vpop.permute.xlu1 %1388 }
 0x13b   : > { %v1373_v62 = vpop.permute.xlu0 %1372  ;;  %v1939_v34 = vsel %vm1911_vm8, %v1906_v28, %v1389_v27 }
 0x13c   : > { %v1923_v39 = vsel %vm1911_vm8, %v1890_v12, %v1373_v62 }
 0x13e   : > { %v1659_v14 = vpop.permute.xlu1 %1658 }
 0x13f   : > { %v1643_v21 = vpop.permute.xlu0 %1642  ;;  %v1970_v24 = vsel %vm1944_vm9, %v1937_v23, %v1659_v14 }
 0x140   : > { %v1954_v4 = vsel %vm1944_vm9, %v1921_v40, %v1643_v21 }
 0x142   : > { %v1661_v10 = vpop.permute.xlu1 %1660 }
 0x143   : > { %v1645_v16 = vpop.permute.xlu0 %1644  ;;  %v1972_v0 = vsel %vm1944_vm9, %v1939_v34, %v1661_v10 }
 0x144   : > { %v1956_v5 = vsel %vm1944_vm9, %v1923_v39, %v1645_v16 }
 0x146   : > { %v1739_v25 = vpop.permute.xlu1 %1738 }
 0x147   : > { %v2003_v9 = vsel %vm1977_vm10, %v1970_v24, %v1739_v25  ;;  %v1723_v3 = vpop.permute.xlu0 %1722 }
 0x148   : > { %v1987_v37 = vsel %vm1977_vm10, %v1954_v4, %v1723_v3  ;;  %3064 = vmatprep.mubr.msk.bf16.mxu1 %vm2030_vm11, %v2003_v9 }
 0x149   : > { %3048 = vmatprep.mubr.msk.bf16.mxu0 %vm2030_vm11, %v1987_v37 }
 0x14a   : > { %v734_v29 = vpop.permute.xlu1 %733 }
 0x14b   : > { %v718_v42 = vpop.permute.xlu0 %717  ;;  %v1776_v30 = vsel %vm1746_vm3, %v4023_v47, %v734_v29 }
 0x14c   : > { %v1760_v31 = vsel %vm1746_vm3, %v4032_v56, %v718_v42 }
 0x14e   : > { %v1741_v45 = vpop.permute.xlu1 %1740 }
 0x14f   : > { %v2005_v33 = vsel %vm1977_vm10, %v1972_v0, %v1741_v45  ;;  %v1725_v7 = vpop.permute.xlu0 %1724 }
 0x150   : > { %v1989_v26 = vsel %vm1977_vm10, %v1956_v5, %v1725_v7  ;;  %3065 = vmatmul.mubr.msk.bf16.gmra.mrb[8].mxu1 %vm2030_vm11, %v2005_v33  ;;  %v4465_v7 = vld [vmem:[%s4617_s2] ss:$0 sm:$0xff] }
 0x151   : > { %3049 = vmatmul.mubr.msk.bf16.gmra.mrb[8].mxu0 %vm2030_vm11, %v1989_v26  ;;  %v4470_v26 = vld [vmem:[%s4617_s2 + $0x1] ss:$0 sm:$0xff] }
 0x152   : > { %v736_v44 = vpop.permute.xlu1 %735 }
 0x153   : > { %v720_v2 = vpop.permute.xlu0 %719  ;;  %v1778_v25 = vsel %vm1746_vm3, %v4088_v32, %v736_v44 }
 0x154   : > { %v1762_v56 = vsel %vm1746_vm3, %v4096_v38, %v720_v2 }
 0x156   : > { %v815_v43 = vpop.permute.xlu1 %814 }
 0x157   : > { %v799_v49 = vpop.permute.xlu0 %798  ;;  %v1809_v16 = vsel %vm1779_vm4, %v1776_v30, %v815_v43 }
 0x158   : > { %v1793_v57 = vsel %vm1779_vm4, %v1760_v31, %v799_v49 }
 0x15a   : > { %v817_v36 = vpop.permute.xlu1 %816 }
 0x15b   : > { %v801_v54 = vpop.permute.xlu0 %800  ;;  %v1811_v9 = vsel %vm1779_vm4, %v1778_v25, %v817_v36 }
 0x15c   : > { %v1795_v8 = vsel %vm1779_vm4, %v1762_v56, %v801_v54 }
 0x15e   : > { %v927_v1 = vpop.permute.xlu1 %926 }
 0x15f   : > { %v911_v63 = vpop.permute.xlu0 %910  ;;  %v1842_v60 = vsel %vm1812_vm5, %v1809_v16, %v927_v1 }
 0x160   : > { %v1826_v23 = vsel %vm1812_vm5, %v1793_v57, %v911_v63 }
 0x162   : > { %v929_v6 = vpop.permute.xlu1 %928 }
 0x163   : > { %v913_v46 = vpop.permute.xlu0 %912  ;;  %v1844_v37 = vsel %vm1812_vm5, %v1811_v9, %v929_v6 }
 0x164   : > { %v1828_v11 = vsel %vm1812_vm5, %v1795_v8, %v913_v46 }
 0x166   : > { %v1199_v50 = vpop.permute.xlu1 %1198 }
 0x167   : > { %v1183_v13 = vpop.permute.xlu0 %1182  ;;  %v1875_v40 = vsel %vm1845_vm6, %v1842_v60, %v1199_v50 }
 0x168   : > { %v1859_v47 = vsel %vm1845_vm6, %v1826_v23, %v1183_v13 }
 0x16a   : > { %v1201_v27 = vpop.permute.xlu1 %1200 }
 0x16b   : > { %v1185_v62 = vpop.permute.xlu0 %1184  ;;  %v1877_v17 = vsel %vm1845_vm6, %v1844_v37, %v1201_v27 }
 0x16c   : > { %v1861_v61 = vsel %vm1845_vm6, %v1828_v11, %v1185_v62 }
 0x16e   : > { %v1279_v14 = vpop.permute.xlu1 %1278 }
 0x16f   : > { %v1263_v21 = vpop.permute.xlu0 %1262  ;;  %v1908_v4 = vsel %vm1878_vm7, %v1875_v40, %v1279_v14 }
 0x170   : > { %v1892_v3 = vsel %vm1878_vm7, %v1859_v47, %v1263_v21 }
 0x172   : > { %v1281_v15 = vpop.permute.xlu1 %1280 }
 0x173   : > { %v1265_v52 = vpop.permute.xlu0 %1264  ;;  %v1910_v22 = vsel %vm1878_vm7, %v1877_v17, %v1281_v15 }
 0x174   : > { %v1894_v35 = vsel %vm1878_vm7, %v1861_v61, %v1265_v52 }
 0x176   : > { %v1391_v48 = vpop.permute.xlu1 %1390 }
 0x177   : > { %v1375_v58 = vpop.permute.xlu0 %1374  ;;  %v1941_v20 = vsel %vm1911_vm8, %v1908_v4, %v1391_v48 }
 0x178   : > { %v1925_v53 = vsel %vm1911_vm8, %v1892_v3, %v1375_v58 }
 0x17a   : > { %v1393_v18 = vpop.permute.xlu1 %1392 }
 0x17b   : > { %v1377_v41 = vpop.permute.xlu0 %1376  ;;  %v1943_v28 = vsel %vm1911_vm8, %v1910_v22, %v1393_v18 }
 0x17c   : > { %v1927_v12 = vsel %vm1911_vm8, %v1894_v35, %v1377_v41 }
 0x17e   : > { %v1663_v59 = vpop.permute.xlu1 %1662 }
 0x17f   : > { %v1647_v10 = vpop.permute.xlu0 %1646  ;;  %v1974_v32 = vsel %vm1944_vm9, %v1941_v20, %v1663_v59 }
 0x180   : > { %v1958_v38 = vsel %vm1944_vm9, %v1925_v53, %v1647_v10 }
 0x182   : > { %v1665_v55 = vpop.permute.xlu1 %1664 }
 0x183   : > { %v1649_v24 = vpop.permute.xlu0 %1648  ;;  %v1976_v34 = vsel %vm1944_vm9, %v1943_v28, %v1665_v55 }
 0x184   : > { %v1960_v0 = vsel %vm1944_vm9, %v1927_v12, %v1649_v24 }
 0x186   : > { %v1743_v19 = vpop.permute.xlu1 %1742 }
 0x187   : > { %v2007_v51 = vsel %vm1977_vm10, %v1974_v32, %v1743_v19  ;;  %v1727_v29 = vpop.permute.xlu0 %1726 }
 0x188   : > { %v1991_v42 = vsel %vm1977_vm10, %v1958_v38, %v1727_v29  ;;  %3068 = vmatprep.mubr.msk.bf16.mxu1 %vm2030_vm11, %v2007_v51 }
 0x189   : > { %3052 = vmatprep.mubr.msk.bf16.mxu0 %vm2030_vm11, %v1991_v42 }
 0x18a   : > { %v1745_v39 = vpop.permute.xlu1 %1744 }
 0x18b   : > { %v2009_v45 = vsel %vm1977_vm10, %v1976_v34, %v1745_v39  ;;  %v1729_v5 = vpop.permute.xlu0 %1728 }
 0x18c   : > { %v1993_v33 = vsel %vm1977_vm10, %v1960_v0, %v1729_v5  ;;  %3069 = vmatmul.mubr.msk.bf16.gmra.mrb[12].mxu1 %vm2030_vm11, %v2009_v45 }
 0x18d   : > { %3053 = vmatmul.mubr.msk.bf16.gmra.mrb[12].mxu0 %vm2030_vm11, %v1993_v33 }
 0x1a3   : > { %v3058_v44 = vpop.f32.mrb[0].mxu1 }
 0x1a4   : > { %v3042_v2 = vpop.f32.mrb[0].mxu0  ;;  %v2251_v43 = vmul.f32 %v3058_v44, %v4465_v7  ;;  %v2165_v49 = vpop.f32.mrb[1].mxu1 }
 0x1a5   : > { %v2235_v36 = vmul.f32 %v3042_v2, %v4465_v7  ;;  %v2101_v54 = vpop.f32.mrb[1].mxu0  ;;  %v2249_v1 = vmul.f32 %v4465_v7, %v2165_v49  ;;  %v3059_v63 = vpop.f32.mrb[2].mxu1 }
 0x1a6   : > { %v2288_v6 = vadd.f32 %v4470_v26, %v2251_v43  ;;  %v2233_v46 = vmul.f32 %v4465_v7, %v2101_v54  ;;  %v3043_v50 = vpop.f32.mrb[2].mxu0  ;;  %v2252_v13 = vmul.f32 %v3059_v63, %v4465_v7  ;;  %v2168_v27 = vpop.f32.mrb[3].mxu1 }
 0x1a7   : > { %v2272_v62 = vadd.f32 %v4470_v26, %v2235_v36  ;;  %v2286_v14 = vadd.f32 %v4470_v26, %v2249_v1  ;;  %v2236_v21 = vmul.f32 %v3043_v50, %v4465_v7  ;;  %v2104_v15 = vpop.f32.mrb[3].mxu0  ;;  %v2250_v52 = vmul.f32 %v4465_v7, %v2168_v27 }
 0x1a8   : > { %v2270_v48 = vadd.f32 %v4470_v26, %v2233_v46  ;;  %v2289_v58 = vadd.f32 %v4470_v26, %v2252_v13  ;;  %v2234_v18 = vmul.f32 %v4465_v7, %v2104_v15  ;;  %v2320_v10 = vmax.f32 %v2288_v6, 0.0 }
 0x1a9   : > { %v2273_v41 = vadd.f32 %v4470_v26, %v2236_v21  ;;  %v2287_v59 = vadd.f32 %v4470_v26, %v2250_v52  ;;  %v2304_v16 = vmax.f32 %v2272_v62, 0.0  ;;  %v2318_v57 = vmax.f32 %v2286_v14, 0.0 }
 0x1aa   : > { %v2321_v30 = vmax.f32 %v2289_v58, 0.0  ;;  %v2271_v31 = vadd.f32 %v4470_v26, %v2234_v18  ;;  %v2302_v23 = vmax.f32 %v2270_v48, 0.0 }
 0x1ab   : > { %v2305_v60 = vmax.f32 %v2273_v41, 0.0  ;;  %v2319_v55 = vmax.f32 %v2287_v59, 0.0 }
 0x1ac   : > { %v2968_v40 = vpack.c.bf16 %v2321_v30, %v2320_v10  ;;  %v2303_v24 = vmax.f32 %v2271_v31, 0.0 }
 0x1ad   : > { %v2928_v25 = vpack.c.bf16 %v2305_v60, %v2304_v16  ;;  %v2963_v47 = vpack.c.bf16 %v2319_v55, %v2318_v57 }
 0x1ae   : > { %3008 = vst [vmem:[%s4491_s8 + $0x48] sm:$0xff] %v2968_v40   ;;  %v2923_v4 = vpack.c.bf16 %v2303_v24, %v2302_v23 }
 0x1af   : > { %3000 = vst [vmem:[%s4491_s8 + $0x8] sm:$0xff] %v2928_v25   ;;  %3007 = vst [vmem:[%s4491_s8 + $0x40] sm:$0xff] %v2963_v47  }
 0x1b0   : > { %2924 = vst [vmem:[%s4491_s8] sm:$0xff] %v2923_v4  }
 0x1e3   : > { %v3062_v56 = vpop.f32.mrb[4].mxu1 }
 0x1e4   : > { %v3046_v9 = vpop.f32.mrb[4].mxu0  ;;  %v2255_v3 = vmul.f32 %v3062_v56, %v4465_v7  ;;  %v2181_v20 = vpop.f32.mrb[5].mxu1 }
 0x1e5   : > { %v2239_v8 = vmul.f32 %v3046_v9, %v4465_v7  ;;  %v2117_v37 = vpop.f32.mrb[5].mxu0  ;;  %v2253_v53 = vmul.f32 %v4465_v7, %v2181_v20  ;;  %v3063_v32 = vpop.f32.mrb[6].mxu1 }
 0x1e6   : > { %v2292_v19 = vadd.f32 %v4470_v26, %v2255_v3  ;;  %v2237_v11 = vmul.f32 %v4465_v7, %v2117_v37  ;;  %v3047_v17 = vpop.f32.mrb[6].mxu0  ;;  %v2256_v38 = vmul.f32 %v3063_v32, %v4465_v7  ;;  %v2184_v51 = vpop.f32.mrb[7].mxu1 }
 0x1e7   : > { %v2276_v29 = vadd.f32 %v4470_v26, %v2239_v8  ;;  %v2290_v61 = vadd.f32 %v4470_v26, %v2253_v53  ;;  %v2240_v22 = vmul.f32 %v3047_v17, %v4465_v7  ;;  %v2120_v42 = vpop.f32.mrb[7].mxu0  ;;  %v2254_v35 = vmul.f32 %v4465_v7, %v2184_v51 }
 0x1e8   : > { %v2274_v28 = vadd.f32 %v4470_v26, %v2237_v11  ;;  %v2293_v12 = vadd.f32 %v4470_v26, %v2256_v38  ;;  %v2238_v34 = vmul.f32 %v4465_v7, %v2120_v42  ;;  %v2324_v45 = vmax.f32 %v2292_v19, 0.0 }
 0x1e9   : > { %v2277_v39 = vadd.f32 %v4470_v26, %v2240_v22  ;;  %v2291_v0 = vadd.f32 %v4470_v26, %v2254_v35  ;;  %v2308_v44 = vmax.f32 %v2276_v29, 0.0  ;;  %v2322_v2 = vmax.f32 %v2290_v61, 0.0 }
 0x1ea   : > { %v2325_v5 = vmax.f32 %v2293_v12, 0.0  ;;  %v2275_v33 = vadd.f32 %v4470_v26, %v2238_v34  ;;  %v2306_v36 = vmax.f32 %v2274_v28, 0.0 }
 0x1eb   : > { %v2309_v43 = vmax.f32 %v2277_v39, 0.0  ;;  %v2323_v49 = vmax.f32 %v2291_v0, 0.0 }
 0x1ec   : > { %v2978_v54 = vpack.c.bf16 %v2325_v5, %v2324_v45  ;;  %v2307_v1 = vmax.f32 %v2275_v33, 0.0 }
 0x1ed   : > { %v2938_v63 = vpack.c.bf16 %v2309_v43, %v2308_v44  ;;  %v2973_v6 = vpack.c.bf16 %v2323_v49, %v2322_v2 }
 0x1ee   : > { %3010 = vst [vmem:[%s4491_s8 + $0x58] sm:$0xff] %v2978_v54   ;;  %v2933_v46 = vpack.c.bf16 %v2307_v1, %v2306_v36 }
 0x1ef   : > { %3002 = vst [vmem:[%s4491_s8 + $0x18] sm:$0xff] %v2938_v63   ;;  %3009 = vst [vmem:[%s4491_s8 + $0x50] sm:$0xff] %v2973_v6  }
 0x1f0   : > { %3001 = vst [vmem:[%s4491_s8 + $0x10] sm:$0xff] %v2933_v46  }
 0x223   : > { %v3066_v50 = vpop.f32.mrb[8].mxu1 }
 0x224   : > { %v3050_v13 = vpop.f32.mrb[8].mxu0  ;;  %v2259_v27 = vmul.f32 %v3066_v50, %v4465_v7  ;;  %v2197_v62 = vpop.f32.mrb[9].mxu1 }
 0x225   : > { %v2243_v14 = vmul.f32 %v3050_v13, %v4465_v7  ;;  %v2133_v21 = vpop.f32.mrb[9].mxu0  ;;  %v2257_v15 = vmul.f32 %v4465_v7, %v2197_v62  ;;  %v3067_v52 = vpop.f32.mrb[10].mxu1 }
 0x226   : > { %v2296_v48 = vadd.f32 %v4470_v26, %v2259_v27  ;;  %v2241_v58 = vmul.f32 %v4465_v7, %v2133_v21  ;;  %v3051_v18 = vpop.f32.mrb[10].mxu0  ;;  %v2260_v41 = vmul.f32 %v3067_v52, %v4465_v7  ;;  %v2200_v59 = vpop.f32.mrb[11].mxu1 }
 0x227   : > { %v2280_v10 = vadd.f32 %v4470_v26, %v2243_v14  ;;  %v2294_v30 = vadd.f32 %v4470_v26, %v2257_v15  ;;  %v2244_v31 = vmul.f32 %v3051_v18, %v4465_v7  ;;  %v2136_v16 = vpop.f32.mrb[11].mxu0  ;;  %v2258_v57 = vmul.f32 %v4465_v7, %v2200_v59 }
 0x228   : > { %v2278_v60 = vadd.f32 %v4470_v26, %v2241_v58  ;;  %v2297_v55 = vadd.f32 %v4470_v26, %v2260_v41  ;;  %v2242_v23 = vmul.f32 %v4465_v7, %v2136_v16  ;;  %v2328_v25 = vmax.f32 %v2296_v48, 0.0 }
 0x229   : > { %v2281_v40 = vadd.f32 %v4470_v26, %v2244_v31  ;;  %v2295_v24 = vadd.f32 %v4470_v26, %v2258_v57  ;;  %v2312_v56 = vmax.f32 %v2280_v10, 0.0  ;;  %v2326_v9 = vmax.f32 %v2294_v30, 0.0 }
 0x22a   : > { %v2329_v47 = vmax.f32 %v2297_v55, 0.0  ;;  %v2279_v4 = vadd.f32 %v4470_v26, %v2242_v23  ;;  %v2310_v8 = vmax.f32 %v2278_v60, 0.0 }
 0x22b   : > { %v2313_v3 = vmax.f32 %v2281_v40, 0.0  ;;  %v2327_v20 = vmax.f32 %v2295_v24, 0.0 }
 0x22c   : > { %v2988_v37 = vpack.c.bf16 %v2329_v47, %v2328_v25  ;;  %v2311_v53 = vmax.f32 %v2279_v4, 0.0 }
 0x22d   : > { %v2948_v32 = vpack.c.bf16 %v2313_v3, %v2312_v56  ;;  %v2983_v19 = vpack.c.bf16 %v2327_v20, %v2326_v9 }
 0x22e   : > { %3012 = vst [vmem:[%s4491_s8 + $0x68] sm:$0xff] %v2988_v37   ;;  %v2943_v11 = vpack.c.bf16 %v2311_v53, %v2310_v8 }
 0x22f   : > { %3004 = vst [vmem:[%s4491_s8 + $0x28] sm:$0xff] %v2948_v32   ;;  %3011 = vst [vmem:[%s4491_s8 + $0x60] sm:$0xff] %v2983_v19  }
 0x230   : > { %3003 = vst [vmem:[%s4491_s8 + $0x20] sm:$0xff] %v2943_v11  }
 0x25f   : > { %v3070_v17 = vpop.f32.mrb[12].mxu1 }
 0x260   : > { %v3054_v38 = vpop.f32.mrb[12].mxu0  ;;  %v2263_v51 = vmul.f32 %v3070_v17, %v4465_v7  ;;  %v2213_v29 = vpop.f32.mrb[13].mxu1 }
 0x261   : > { %v2247_v61 = vmul.f32 %v3054_v38, %v4465_v7  ;;  %v2149_v22 = vpop.f32.mrb[13].mxu0  ;;  %v2261_v42 = vmul.f32 %v4465_v7, %v2213_v29  ;;  %v3071_v35 = vpop.f32.mrb[14].mxu1 }
 0x262   : > { %v2300_v28 = vadd.f32 %v4470_v26, %v2263_v51  ;;  %v2245_v12 = vmul.f32 %v4465_v7, %v2149_v22  ;;  %v3055_v34 = vpop.f32.mrb[14].mxu0  ;;  %v2264_v39 = vmul.f32 %v3071_v35, %v4465_v7  ;;  %v2216_v0 = vpop.f32.mrb[15].mxu1 }
 0x263   : > { %v2284_v45 = vadd.f32 %v4470_v26, %v2247_v61  ;;  %v2298_v5 = vadd.f32 %v4470_v26, %v2261_v42  ;;  %v2248_v33 = vmul.f32 %v3055_v34, %v4465_v7  ;;  %v2152_v44 = vpop.f32.mrb[15].mxu0  ;;  %v2262_v2 = vmul.f32 %v4465_v7, %v2216_v0 }
 0x264   : > { %v2282_v43 = vadd.f32 %v4470_v26, %v2245_v12  ;;  %v2301_v49 = vadd.f32 %v4470_v26, %v2264_v39  ;;  %v2246_v36 = vmul.f32 %v4465_v7, %v2152_v44  ;;  %v2332_v63 = vmax.f32 %v2300_v28, 0.0 }
 0x265   : > { %v2285_v54 = vadd.f32 %v4470_v26, %v2248_v33  ;;  %v2299_v1 = vadd.f32 %v4470_v26, %v2262_v2  ;;  %v2316_v50 = vmax.f32 %v2284_v45, 0.0  ;;  %v2330_v13 = vmax.f32 %v2298_v5, 0.0 }
 0x266   : > { %v2333_v6 = vmax.f32 %v2301_v49, 0.0  ;;  %v2283_v46 = vadd.f32 %v4470_v26, %v2246_v36  ;;  %v2314_v7 = vmax.f32 %v2282_v43, 0.0 }
 0x267   : > { %v2317_v27 = vmax.f32 %v2285_v54, 0.0  ;;  %v2331_v62 = vmax.f32 %v2299_v1, 0.0 }
 0x268   : > { %v2998_v14 = vpack.c.bf16 %v2333_v6, %v2332_v63  ;;  %v2315_v21 = vmax.f32 %v2283_v46, 0.0 }
 0x269   : > { %v2958_v15 = vpack.c.bf16 %v2317_v27, %v2316_v50  ;;  %v2993_v52 = vpack.c.bf16 %v2331_v62, %v2330_v13 }
 0x26a   : > { %3014 = vst [vmem:[%s4491_s8 + $0x78] sm:$0xff] %v2998_v14   ;;  %v2953_v26 = vpack.c.bf16 %v2315_v21, %v2314_v7 }
 0x26b   : > { %3006 = vst [vmem:[%s4491_s8 + $0x38] sm:$0xff] %v2958_v15   ;;  %3013 = vst [vmem:[%s4491_s8 + $0x70] sm:$0xff] %v2993_v52  }
 0x26c   : > { %3005 = vst [vmem:[%s4491_s8 + $0x30] sm:$0xff] %v2953_v26  }
 0x26d   : > { %3269 = shalt.err (!%p3266_p5)
}
 0x26e   : > { %s3270_s28 = scalar_lea.hbm %s4558_s19, 2048  ;;  %s3274_s4 = scalar_lea.hbm %s4618_s3, 4096 }
 0x26f   : > { %p3271_p6 = scmp.ne.s32.totalorder %s4558_s19, %s3270_s28  ;;  %p3275_p10 = scmp.lt.u32.totalorder %s4558_s19, %s4618_s3 }
 0x270   : > { %p3276_p11 = scmp.lt.u32.totalorder %s3274_s4, %s3270_s28  ;;  %p3278_p13 = scmp.lt.u32.totalorder %s3270_s28, %s4558_s19 }
 0x271   : > { %p3272_p7 = pnand %p3271_p6, %p3406_p4 }
 0x272   : > { %p3277_p12 = por %p3276_p11, %p3275_p10 }
 0x273   : > { %p3273_p9 = pneg %p3272_p7 }
 0x274   : > { %p3279_p0 = por %p3278_p13, %p3277_p12 }
 0x276   : > { %p3280_p1 = pnand %p3279_p0, %p3273_p9 }
 0x278   : > { %3283 = shalt.err (!%p3280_p1)
}
 0x279   : > { %s3345_s8 = smov 64  }
 0x27a   : > { %3081 = dma.vmem_to_hbm [thread:$0]  (%p3406_p4), %s4561_s10, 2048, %s4558_s19, %s4568_s15, %s3345_s8, %s3345_s8, %s3338_s6  }
 0x27b PF: > { %p3087_p2 = scmp.ge.s32.totalorder %s3334_s17, 2  ;;  %s2526_s9 = sand.u32 1, %s3314_s12  }
 0x27c   : > { %s2527_s11 = scalar_lea.sflag [#allocation3], %s2526_s9 }
 0x27d   : > { %p3084_p3 = pnand %p3087_p2, %p3413_p8 }
 0x27f   : > { %3309 = dma.done.wait (!%p3084_p3), %s2527_s11, 2048  }
 0x280   : > { %3311 = vsyncadd (!%p3084_p3), %s2527_s11, 4294965248  ;;  %s16_s17 = sadd.s32 1, %s3334_s17   ;;  %s4621_s12 = smov %s3318_s13 }
 0x281   : > { %p13_p5 = scmp.ge.s32.totalorder %s16_s17, 4   ;;  %s4622_s13 = smov %s3322_s14 }
 0x282   : > { %s4623_s14 = smov %s3419_s25  ;;  %s4624_s15 = smov %s3330_s16 }
 0x283   : > { %s4625_s16 = smov %s4627_s20  ;;  %15 = sbr.rel (!%p13_p5) target bundleno = 4 (0x4), region = 76 }
 0x28a   :  { %2532 = vsyncpa [#allocation3], 1 }
 0x28b   :  { %2534 = vsyncpa [#allocation3 + $0x1], 1 }

</bundles_post_ra>
